<compile_context>
chip_gen: v5e
topology: v5e:2x2
jax: 0.10.0
libtpu: 0.0.40
codegen_flags: <defaults>
</compile_context>

<pallas_src>
import math
import functools

import jax
import jax.numpy as jnp
import numpy as np
from jax.experimental import pallas as pl
from jax.experimental.pallas import tpu as pltpu


def _flava_attention_kernel(x_ref, wqkv_ref, bqkv_ref, wo_ref, bo_ref,
                            out_ref, *rest,
                            num_heads, head_dim, hidden, emit_probs, mm_dtype):
    if emit_probs:
        probs_ref, qh_ref, vh_ref, kt_ref, ctxh_ref, ctx_ref = rest
    else:
        qh_ref, vh_ref, kt_ref, ctxh_ref, ctx_ref = rest

    h = pl.program_id(1)

    # ---- Prologue (once per batch element, h == 0): fused QKV projection
    #      (bf16 operands, f32 accumulate), a single K^T transpose, and
    #      head-major staging of Q/V.  All slicing here uses static offsets.
    @pl.when(h == 0)
    def _():
        x = x_ref[0].astype(mm_dtype)                                  # (S, H)
        qkv = jnp.dot(x, wqkv_ref[...],
                      preferred_element_type=jnp.float32) + bqkv_ref[0]  # (S, 3H) f32
        # One K transpose per batch element (not per head): K^T lives as (H, S).
        kt_ref[...] = qkv[:, hidden:2 * hidden].astype(kt_ref.dtype).T
        for hh in range(num_heads):                                    # static unroll
            lo = hh * head_dim
            qh_ref[hh] = qkv[:, lo:lo + head_dim].astype(qh_ref.dtype)
            vh_ref[hh] = qkv[:, 2 * hidden + lo:
                             2 * hidden + lo + head_dim].astype(vh_ref.dtype)

    # ---- Per-head attention (grid axis 1).  Only leading-dim / sublane
    #      dynamic indexing -> no masked lane loads/stores in the hot loop.
    qh = qh_ref[h]                                   # (S, dh), 1/sqrt(dh) pre-folded
    vh = vh_ref[h]                                   # (S, dh)
    k_start = pl.multiple_of(h * head_dim, head_dim)
    kth = kt_ref[pl.ds(k_start, head_dim), :]        # (dh, S)

    scores = jnp.dot(qh, kth, preferred_element_type=jnp.float32)      # (S, S) f32
    scores = scores - jnp.max(scores, axis=-1, keepdims=True)
    e = jnp.exp(scores)
    denom = jnp.sum(e, axis=-1, keepdims=True)
    inv = pl.reciprocal(denom, approx=True)
    inv = inv * (2.0 - denom * inv)                  # one Newton step -> f32 accuracy
    probs = e * inv                                  # (S, S) f32

    if emit_probs:
        probs_ref[0, 0] = probs.astype(probs_ref.dtype)

    # Context for this head (bf16 MXU operands, f32 accumulate).
    ctxh_ref[h] = jnp.dot(probs.astype(mm_dtype), vh,
                          preferred_element_type=jnp.float32).astype(ctxh_ref.dtype)

    # ---- Epilogue (once per batch element, h == last): assemble the (S, H)
    #      context slab and run the output projection as a single K=H matmul.
    @pl.when(h == num_heads - 1)
    def _():
        for hh in range(num_heads):                                    # static unroll
            lo = hh * head_dim
            ctx_ref[:, lo:lo + head_dim] = ctxh_ref[hh]
        out = jnp.dot(ctx_ref[...], wo_ref[...],
                      preferred_element_type=jnp.float32) + bo_ref[0]
        out_ref[0] = out.astype(out_ref.dtype)


def _vmem_limit_bytes(S, H, x_isz, out_isz, p_isz, mm_isz, *,
                      emit_probs, single_buffer_weights):
    f32 = 4
    wbuf = 1 if single_buffer_weights else 2
    weights = wbuf * ((H * 3 * H + H * H) * mm_isz + 4 * H * f32)
    x_blk = 2 * S * H * x_isz                       # double-buffered input block
    out_blk = 2 * S * H * out_isz                   # double-buffered output block
    probs_blk = 2 * S * S * p_isz if emit_probs else 0   # per-head probs block
    scratch = 5 * S * H * mm_isz                    # Qh + Vh + K^T + ctx_h + ctx
    transient = S * 3 * H * f32                     # f32 QKV value in the prologue
    need = (weights + x_blk + out_blk + probs_blk + scratch + transient) * 5 // 4
    try:
        cap = int(pltpu.get_tpu_info().vmem_capacity_bytes)
    except Exception:
        cap = 64 * 2 ** 20                          # conservative: v7x per-core VMEM
    cap = int(cap * 0.85)                           # headroom for Mosaic internals
    return int(min(max(need, 32 * 2 ** 20), cap))


def flava_attention(hidden_states, params, *, num_heads,
                    return_probs=True,
                    matmul_dtype=jnp.bfloat16,
                    probs_dtype=jnp.bfloat16):
    """FLAVAAttention forward.

    Returns (attention_output, attention_probs) when return_probs=True, else
    (attention_output,).  return_probs=False is the fast path (no probs HBM
    writeback).  attention_probs are written in `probs_dtype` (bf16 by default;
    the PyTorch reference keeps them f32 — pass probs_dtype=jnp.float32 for
    bit-closer parity).  `matmul_dtype` controls the MXU operand dtype only;
    accumulation and softmax stay f32.
    """
    B, S, H = hidden_states.shape
    assert H % num_heads == 0
    head_dim = H // num_heads
    wq, bq, wk, bk, wv, bv, wo, bo = params

    # Host-side prep (cheap; hoisted under jit):
    #  - fold 1/sqrt(head_dim) into the query projection,
    #  - fuse QKV into one pre-transposed (H, 3H) weight, cast to matmul_dtype,
    #  - keep biases f32 (added after the f32-accumulated matmul).
    scale = 1.0 / math.sqrt(head_dim)
    wqkv_t = jnp.concatenate([wq * scale, wk, wv], axis=0).T.astype(matmul_dtype)
    bqkv = jnp.concatenate([bq * scale, bk, bv]).reshape(1, 3 * H).astype(jnp.float32)
    wo_t = wo.T.astype(matmul_dtype)                                   # (H, H), (in, out)
    bo2 = bo.reshape(1, H).astype(jnp.float32)

    kernel = functools.partial(
        _flava_attention_kernel, num_heads=num_heads, head_dim=head_dim,
        hidden=H, emit_probs=return_probs, mm_dtype=matmul_dtype)

    out_dtype = hidden_states.dtype
    mm_isz = jnp.dtype(matmul_dtype).itemsize
    x_isz = jnp.dtype(hidden_states.dtype).itemsize
    p_isz = jnp.dtype(probs_dtype).itemsize

    def build(single_buffer_weights):
        def wspec(shape):
            # Grid-invariant weights/biases: single buffer if supported.
            if single_buffer_weights:
                return pl.BlockSpec(shape, lambda b, h: (0,) * len(shape),
                                    pipeline_mode=pl.Buffered(1))
            return pl.BlockSpec(shape, lambda b, h: (0,) * len(shape))

        in_specs = [
            pl.BlockSpec((1, S, H), lambda b, h: (b, 0, 0)),   # hidden_states
            wspec((H, 3 * H)),                                  # fused QKV weight
            wspec((1, 3 * H)),                                  # fused QKV bias (f32)
            wspec((H, H)),                                      # output weight
            wspec((1, H)),                                      # output bias (f32)
        ]
        out_spec_hidden = pl.BlockSpec((1, S, H), lambda b, h: (b, 0, 0))
        if return_probs:
            out_shape = (
                jax.ShapeDtypeStruct((B, S, H), out_dtype),
                jax.ShapeDtypeStruct((B, num_heads, S, S), probs_dtype),
            )
            out_specs = [
                out_spec_hidden,
                pl.BlockSpec((1, 1, S, S), lambda b, h: (b, h, 0, 0)),  # per-head block
            ]
        else:
            out_shape = jax.ShapeDtypeStruct((B, S, H), out_dtype)
            out_specs = out_spec_hidden

        scratch_shapes = [
            pltpu.VMEM((num_heads, S, head_dim), matmul_dtype),  # Q, head-major
            pltpu.VMEM((num_heads, S, head_dim), matmul_dtype),  # V, head-major
            pltpu.VMEM((H, S), matmul_dtype),                    # K^T
            pltpu.VMEM((num_heads, S, head_dim), matmul_dtype),  # per-head context
            pltpu.VMEM((S, H), matmul_dtype),                    # assembled context
        ]

        vmem_limit = _vmem_limit_bytes(
            S, H, x_isz, jnp.dtype(out_dtype).itemsize, p_isz, mm_isz,
            emit_probs=return_probs, single_buffer_weights=single_buffer_weights)

        return pl.pallas_call(
            kernel,
            out_shape=out_shape,
            grid_spec=pltpu.PrefetchScalarGridSpec(
                num_scalar_prefetch=0,
                grid=(B, num_heads),
                in_specs=in_specs,
                out_specs=out_specs,
                scratch_shapes=scratch_shapes,
            ),
            compiler_params=pltpu.CompilerParams(
                dimension_semantics=("parallel", "arbitrary"),
                vmem_limit_bytes=vmem_limit,
            ),
        )

    args = (hidden_states, wqkv_t, bqkv, wo_t, bo2)
    try:
        result = build(True)(*args)
    except Exception:
        # pipeline_mode=pl.Buffered may be unsupported in this JAX build;
        # retry with default double-buffered weight blocks.
        result = build(False)(*args)

    return result if return_probs else (result,)


def _reference(hidden_states, params, *, num_heads):
    """Pure-JAX f32 reference mirroring the PyTorch forward."""
    B, S, H = hidden_states.shape
    dh = H // num_heads
    wq, bq, wk, bk, wv, bv, wo, bo = params

    def lin(x, w, b):
        return x @ w.T + b

    def split(x):  # (B,S,H) -> (B,nH,S,dh)
        return x.reshape(B, S, num_heads, dh).transpose(0, 2, 1, 3)

    q = split(lin(hidden_states, wq, bq))
    k = split(lin(hidden_states, wk, bk))
    v = split(lin(hidden_states, wv, bv))
    scores = jnp.einsum("bhqd,bhkd->bhqk", q, k) / math.sqrt(dh)
    probs = jax.nn.softmax(scores, axis=-1)
    ctx = jnp.einsum("bhqk,bhkd->bhqd", probs, v)
    ctx = ctx.transpose(0, 2, 1, 3).reshape(B, S, H)
    out = lin(ctx, wo, bo)
    return out, probs


if __name__ == "__main__":
    # Small config consistent with the module: hidden divisible by num_heads.
    B, S, H, NH = 2, 8, 32, 4

    key = jax.random.PRNGKey(0)
    keys = jax.random.split(key, 9)
    lim = 1.0 / math.sqrt(H)
    wq = jax.random.uniform(keys[0], (H, H), jnp.float32, -lim, lim)
    bq = jax.random.uniform(keys[1], (H,), jnp.float32, -lim, lim)
    wk = jax.random.uniform(keys[2], (H, H), jnp.float32, -lim, lim)
    bk = jax.random.uniform(keys[3], (H,), jnp.float32, -lim, lim)
    wv = jax.random.uniform(keys[4], (H, H), jnp.float32, -lim, lim)
    bv = jax.random.uniform(keys[5], (H,), jnp.float32, -lim, lim)
    wo = jax.random.uniform(keys[6], (H, H), jnp.float32, -lim, lim)
    bo = jax.random.uniform(keys[7], (H,), jnp.float32, -lim, lim)
    params = (wq, bq, wk, bk, wv, bv, wo, bo)

    x = jax.random.normal(keys[8], (B, S, H), jnp.float32)
    ref_out, ref_probs = _reference(x, params, num_heads=NH)

    # 1) Default fast config: bf16 MXU operands, bf16 attention_probs (coarse check).
    out, probs = flava_attention(x, params, num_heads=NH, return_probs=True)
    jax.block_until_ready(out)
    jax.block_until_ready(probs)
    np.testing.assert_allclose(np.asarray(out.astype(jnp.float32)),
                               np.asarray(ref_out), atol=3e-2, rtol=3e-2)
    np.testing.assert_allclose(np.asarray(probs.astype(jnp.float32)),
                               np.asarray(ref_probs), atol=3e-2, rtol=3e-2)

    # 2) Strict numerics: f32 operands + f32 probs, tight tolerance vs reference.
    out32, probs32 = flava_attention(x, params, num_heads=NH, return_probs=True,
                                     matmul_dtype=jnp.float32,
                                     probs_dtype=jnp.float32)
    jax.block_until_ready(out32)
    np.testing.assert_allclose(np.asarray(out32), np.asarray(ref_out),
                               atol=1e-5, rtol=1e-5)
    np.testing.assert_allclose(np.asarray(probs32), np.asarray(ref_probs),
                               atol=1e-5, rtol=1e-5)

    # 3) Fast path: probs HBM writeback skipped entirely.
    (out_fast,) = flava_attention(x, params, num_heads=NH, return_probs=False)
    jax.block_until_ready(out_fast)
    np.testing.assert_allclose(np.asarray(out_fast.astype(jnp.float32)),
                               np.asarray(ref_out), atol=3e-2, rtol=3e-2)

    print("KERNEL_OK")
</pallas_src>

<mosaic_0001>
module attributes {stable_mosaic.version = 11 : i64} {
  func.func @_flava_attention_kernel(%arg0: i32, %arg1: i32, %arg2: memref<1x8x32xf32, #tpu.memory_space<vmem>>, %arg3: memref<32x96xbf16, #tpu.memory_space<vmem>>, %arg4: memref<1x96xf32, #tpu.memory_space<vmem>>, %arg5: memref<32x32xbf16, #tpu.memory_space<vmem>>, %arg6: memref<1x32xf32, #tpu.memory_space<vmem>>, %arg7: memref<1x8x32xf32, #tpu.memory_space<vmem>>, %arg8: memref<1x1x8x8xbf16, #tpu.memory_space<vmem>>, %arg9: memref<4x8x8xbf16, #tpu.memory_space<vmem>>, %arg10: memref<4x8x8xbf16, #tpu.memory_space<vmem>>, %arg11: memref<32x8xbf16, #tpu.memory_space<vmem>>, %arg12: memref<4x8x8xbf16, #tpu.memory_space<vmem>>, %arg13: memref<8x32xbf16, #tpu.memory_space<vmem>>) attributes {dimension_semantics = [#tpu.dimension_semantics<parallel>, #tpu.dimension_semantics<arbitrary>], iteration_bounds = array<i64: 2, 4>, scalar_prefetch = 0 : i64, scratch_operands = 5 : i64, tpu.core_type = #tpu.core_type<tc>, window_params = [{transform_indices = @transform_0, window_bounds = array<i64: 1, 8, 32>}, {pipeline_mode = #tpu.pipeline_mode<synchronous>, transform_indices = @transform_1, window_bounds = array<i64: 32, 96>}, {pipeline_mode = #tpu.pipeline_mode<synchronous>, transform_indices = @transform_2, window_bounds = array<i64: 1, 96>}, {pipeline_mode = #tpu.pipeline_mode<synchronous>, transform_indices = @transform_3, window_bounds = array<i64: 32, 32>}, {pipeline_mode = #tpu.pipeline_mode<synchronous>, transform_indices = @transform_4, window_bounds = array<i64: 1, 32>}, {transform_indices = @transform_5, window_bounds = array<i64: 1, 8, 32>}, {transform_indices = @transform_6, window_bounds = array<i64: 1, 1, 8, 8>}]} {
    %c0_i32 = arith.constant 0 : i32
    %0 = arith.cmpi eq, %arg1, %c0_i32 : i32
    %1 = arith.extui %0 : i1 to i32
    %c0_i32_0 = arith.constant 0 : i32
    %2 = arith.cmpi ne, %1, %c0_i32_0 : i32
    scf.if %2 {
      %c0_16 = arith.constant 0 : index
      %c0_17 = arith.constant 0 : index
      %c0_18 = arith.constant 0 : index
      %42 = vector.load %arg2[%c0_16, %c0_17, %c0_18] : memref<1x8x32xf32, #tpu.memory_space<vmem>>, vector<1x8x32xf32>
      %43 = vector.shape_cast %42 : vector<1x8x32xf32> to vector<8x32xf32>
      %44 = arith.truncf %43 : vector<8x32xf32> to vector<8x32xbf16>
      %c0_19 = arith.constant 0 : index
      %c0_20 = arith.constant 0 : index
      %45 = vector.load %arg3[%c0_19, %c0_20] : memref<32x96xbf16, #tpu.memory_space<vmem>>, vector<32x96xbf16>
      %cst_21 = arith.constant dense<0.000000e+00> : vector<8x96xf32>
      %46 = tpu.matmul %44, %45, %cst_21 {dimension_numbers = #tpu.dot_dimension_numbers<[1], [0], [0], [1], [0, 0, 1, 1], [], []>} : vector<8x32xbf16>, vector<32x96xbf16>, vector<8x96xf32> -> vector<8x96xf32>
      %c0_22 = arith.constant 0 : index
      %c0_23 = arith.constant 0 : index
      %47 = vector.load %arg4[%c0_22, %c0_23] : memref<1x96xf32, #tpu.memory_space<vmem>>, vector<1x96xf32>
      %48 = vector.shape_cast %47 : vector<1x96xf32> to vector<96xf32>
      %49 = vector.shape_cast %48 : vector<96xf32> to vector<1x96xf32>
      %50 = vector.broadcast %49 : vector<1x96xf32> to vector<8x96xf32>
      %51 = arith.addf %46, %50 : vector<8x96xf32>
      %52 = vector.extract_strided_slice %51 {offsets = [0, 32], sizes = [8, 32], strides = [1, 1]} : vector<8x96xf32> to vector<8x32xf32>
      %53 = arith.truncf %52 : vector<8x32xf32> to vector<8x32xbf16>
      %54 = tpu.transpose %53, [1, 0] : vector<8x32xbf16> -> vector<32x8xbf16>
      %c0_24 = arith.constant 0 : index
      %c0_25 = arith.constant 0 : index
      %55 = vector.load %arg11[%c0_24, %c0_25] : memref<32x8xbf16, #tpu.memory_space<vmem>>, vector<32x8xbf16>
      tpu.vector_store %arg11[%c0_24, %c0_25], %54 {strides = array<i32>} : memref<32x8xbf16, #tpu.memory_space<vmem>>, vector<32x8xbf16>,
      %56 = vector.extract_strided_slice %51 {offsets = [0, 0], sizes = [8, 8], strides = [1, 1]} : vector<8x96xf32> to vector<8x8xf32>
      %57 = arith.truncf %56 : vector<8x8xf32> to vector<8x8xbf16>
      %c0_26 = arith.constant 0 : index
      %c0_27 = arith.constant 0 : index
      %c0_28 = arith.constant 0 : index
      %58 = vector.load %arg9[%c0_26, %c0_27, %c0_28] : memref<4x8x8xbf16, #tpu.memory_space<vmem>>, vector<1x8x8xbf16>
      %59 = vector.shape_cast %58 : vector<1x8x8xbf16> to vector<8x8xbf16>
      %60 = vector.shape_cast %57 : vector<8x8xbf16> to vector<1x8x8xbf16>
      tpu.vector_store %arg9[%c0_26, %c0_27, %c0_28], %60 {strides = array<i32>} : memref<4x8x8xbf16, #tpu.memory_space<vmem>>, vector<1x8x8xbf16>,
      %61 = vector.extract_strided_slice %51 {offsets = [0, 64], sizes = [8, 8], strides = [1, 1]} : vector<8x96xf32> to vector<8x8xf32>
      %62 = arith.truncf %61 : vector<8x8xf32> to vector<8x8xbf16>
      %c0_29 = arith.constant 0 : index
      %c0_30 = arith.constant 0 : index
      %c0_31 = arith.constant 0 : index
      %63 = vector.load %arg10[%c0_29, %c0_30, %c0_31] : memref<4x8x8xbf16, #tpu.memory_space<vmem>>, vector<1x8x8xbf16>
      %64 = vector.shape_cast %63 : vector<1x8x8xbf16> to vector<8x8xbf16>
      %65 = vector.shape_cast %62 : vector<8x8xbf16> to vector<1x8x8xbf16>
      tpu.vector_store %arg10[%c0_29, %c0_30, %c0_31], %65 {strides = array<i32>} : memref<4x8x8xbf16, #tpu.memory_space<vmem>>, vector<1x8x8xbf16>,
      %66 = vector.extract_strided_slice %51 {offsets = [0, 8], sizes = [8, 8], strides = [1, 1]} : vector<8x96xf32> to vector<8x8xf32>
      %67 = arith.truncf %66 : vector<8x8xf32> to vector<8x8xbf16>
      %c1 = arith.constant 1 : index
      %c0_32 = arith.constant 0 : index
      %c0_33 = arith.constant 0 : index
      %68 = vector.load %arg9[%c1, %c0_32, %c0_33] : memref<4x8x8xbf16, #tpu.memory_space<vmem>>, vector<1x8x8xbf16>
      %69 = vector.shape_cast %68 : vector<1x8x8xbf16> to vector<8x8xbf16>
      %70 = vector.shape_cast %67 : vector<8x8xbf16> to vector<1x8x8xbf16>
      tpu.vector_store %arg9[%c1, %c0_32, %c0_33], %70 {strides = array<i32>} : memref<4x8x8xbf16, #tpu.memory_space<vmem>>, vector<1x8x8xbf16>,
      %71 = vector.extract_strided_slice %51 {offsets = [0, 72], sizes = [8, 8], strides = [1, 1]} : vector<8x96xf32> to vector<8x8xf32>
      %72 = arith.truncf %71 : vector<8x8xf32> to vector<8x8xbf16>
      %c1_34 = arith.constant 1 : index
      %c0_35 = arith.constant 0 : index
      %c0_36 = arith.constant 0 : index
      %73 = vector.load %arg10[%c1_34, %c0_35, %c0_36] : memref<4x8x8xbf16, #tpu.memory_space<vmem>>, vector<1x8x8xbf16>
      %74 = vector.shape_cast %73 : vector<1x8x8xbf16> to vector<8x8xbf16>
      %75 = vector.shape_cast %72 : vector<8x8xbf16> to vector<1x8x8xbf16>
      tpu.vector_store %arg10[%c1_34, %c0_35, %c0_36], %75 {strides = array<i32>} : memref<4x8x8xbf16, #tpu.memory_space<vmem>>, vector<1x8x8xbf16>,
      %76 = vector.extract_strided_slice %51 {offsets = [0, 16], sizes = [8, 8], strides = [1, 1]} : vector<8x96xf32> to vector<8x8xf32>
      %77 = arith.truncf %76 : vector<8x8xf32> to vector<8x8xbf16>
      %c2 = arith.constant 2 : index
      %c0_37 = arith.constant 0 : index
      %c0_38 = arith.constant 0 : index
      %78 = vector.load %arg9[%c2, %c0_37, %c0_38] : memref<4x8x8xbf16, #tpu.memory_space<vmem>>, vector<1x8x8xbf16>
      %79 = vector.shape_cast %78 : vector<1x8x8xbf16> to vector<8x8xbf16>
      %80 = vector.shape_cast %77 : vector<8x8xbf16> to vector<1x8x8xbf16>
      tpu.vector_store %arg9[%c2, %c0_37, %c0_38], %80 {strides = array<i32>} : memref<4x8x8xbf16, #tpu.memory_space<vmem>>, vector<1x8x8xbf16>,
      %81 = vector.extract_strided_slice %51 {offsets = [0, 80], sizes = [8, 8], strides = [1, 1]} : vector<8x96xf32> to vector<8x8xf32>
      %82 = arith.truncf %81 : vector<8x8xf32> to vector<8x8xbf16>
      %c2_39 = arith.constant 2 : index
      %c0_40 = arith.constant 0 : index
      %c0_41 = arith.constant 0 : index
      %83 = vector.load %arg10[%c2_39, %c0_40, %c0_41] : memref<4x8x8xbf16, #tpu.memory_space<vmem>>, vector<1x8x8xbf16>
      %84 = vector.shape_cast %83 : vector<1x8x8xbf16> to vector<8x8xbf16>
      %85 = vector.shape_cast %82 : vector<8x8xbf16> to vector<1x8x8xbf16>
      tpu.vector_store %arg10[%c2_39, %c0_40, %c0_41], %85 {strides = array<i32>} : memref<4x8x8xbf16, #tpu.memory_space<vmem>>, vector<1x8x8xbf16>,
      %86 = vector.extract_strided_slice %51 {offsets = [0, 24], sizes = [8, 8], strides = [1, 1]} : vector<8x96xf32> to vector<8x8xf32>
      %87 = arith.truncf %86 : vector<8x8xf32> to vector<8x8xbf16>
      %c3 = arith.constant 3 : index
      %c0_42 = arith.constant 0 : index
      %c0_43 = arith.constant 0 : index
      %88 = vector.load %arg9[%c3, %c0_42, %c0_43] : memref<4x8x8xbf16, #tpu.memory_space<vmem>>, vector<1x8x8xbf16>
      %89 = vector.shape_cast %88 : vector<1x8x8xbf16> to vector<8x8xbf16>
      %90 = vector.shape_cast %87 : vector<8x8xbf16> to vector<1x8x8xbf16>
      tpu.vector_store %arg9[%c3, %c0_42, %c0_43], %90 {strides = array<i32>} : memref<4x8x8xbf16, #tpu.memory_space<vmem>>, vector<1x8x8xbf16>,
      %91 = vector.extract_strided_slice %51 {offsets = [0, 88], sizes = [8, 8], strides = [1, 1]} : vector<8x96xf32> to vector<8x8xf32>
      %92 = arith.truncf %91 : vector<8x8xf32> to vector<8x8xbf16>
      %c3_44 = arith.constant 3 : index
      %c0_45 = arith.constant 0 : index
      %c0_46 = arith.constant 0 : index
      %93 = vector.load %arg10[%c3_44, %c0_45, %c0_46] : memref<4x8x8xbf16, #tpu.memory_space<vmem>>, vector<1x8x8xbf16>
      %94 = vector.shape_cast %93 : vector<1x8x8xbf16> to vector<8x8xbf16>
      %95 = vector.shape_cast %92 : vector<8x8xbf16> to vector<1x8x8xbf16>
      tpu.vector_store %arg10[%c3_44, %c0_45, %c0_46], %95 {strides = array<i32>} : memref<4x8x8xbf16, #tpu.memory_space<vmem>>, vector<1x8x8xbf16>,
    } else {
    }
    %3 = arith.index_cast %arg1 : i32 to index
    %c0 = arith.constant 0 : index
    %c0_1 = arith.constant 0 : index
    %4 = vector.load %arg9[%3, %c0, %c0_1] : memref<4x8x8xbf16, #tpu.memory_space<vmem>>, vector<1x8x8xbf16>
    %5 = vector.shape_cast %4 : vector<1x8x8xbf16> to vector<8x8xbf16>
    %6 = arith.index_cast %arg1 : i32 to index
    %c0_2 = arith.constant 0 : index
    %c0_3 = arith.constant 0 : index
    %7 = vector.load %arg10[%6, %c0_2, %c0_3] : memref<4x8x8xbf16, #tpu.memory_space<vmem>>, vector<1x8x8xbf16>
    %8 = vector.shape_cast %7 : vector<1x8x8xbf16> to vector<8x8xbf16>
    %c8_i32 = arith.constant 8 : i32
    %9 = arith.muli %arg1, %c8_i32 : i32
    %10 = tpu.assume_multiple %9, 8 : i32
    %11 = arith.index_cast %10 : i32 to index
    %c0_4 = arith.constant 0 : index
    %12 = vector.load %arg11[%11, %c0_4] : memref<32x8xbf16, #tpu.memory_space<vmem>>, vector<8x8xbf16>
    %cst = arith.constant dense<0.000000e+00> : vector<8x8xf32>
    %13 = tpu.matmul %5, %12, %cst {dimension_numbers = #tpu.dot_dimension_numbers<[1], [0], [0], [1], [0, 0, 1, 1], [], []>} : vector<8x8xbf16>, vector<8x8xbf16>, vector<8x8xf32> -> vector<8x8xf32>
    %cst_5 = arith.constant dense<0xFF800000> : vector<8xf32>
    %14 = vector.multi_reduction <maximumf>, %13, %cst_5 [1] : vector<8x8xf32> to vector<8xf32>
    %15 = vector.shape_cast %14 : vector<8xf32> to vector<8x1xf32>
    %16 = vector.broadcast %15 : vector<8x1xf32> to vector<8x8xf32>
    %17 = arith.subf %13, %16 : vector<8x8xf32>
    %18 = math.exp %17 : vector<8x8xf32>
    %cst_6 = arith.constant dense<0.000000e+00> : vector<8xf32>
    %19 = vector.multi_reduction <add>, %18, %cst_6 [1] : vector<8x8xf32> to vector<8xf32>
    %20 = vector.shape_cast %19 : vector<8xf32> to vector<8x1xf32>
    %21 = tpu.reciprocal %20 {approx = true} : vector<8x1xf32> -> vector<8x1xf32>
    %22 = arith.mulf %20, %21 : vector<8x1xf32>
    %cst_7 = arith.constant 2.000000e+00 : f32
    %23 = vector.broadcast %cst_7 : f32 to vector<8x1xf32>
    %24 = arith.subf %23, %22 : vector<8x1xf32>
    %25 = arith.mulf %21, %24 : vector<8x1xf32>
    %26 = vector.broadcast %25 : vector<8x1xf32> to vector<8x8xf32>
    %27 = arith.mulf %18, %26 : vector<8x8xf32>
    %28 = arith.truncf %27 : vector<8x8xf32> to vector<8x8xbf16>
    %c0_8 = arith.constant 0 : index
    %c0_9 = arith.constant 0 : index
    %c0_10 = arith.constant 0 : index
    %c0_11 = arith.constant 0 : index
    %29 = vector.load %arg8[%c0_8, %c0_9, %c0_10, %c0_11] : memref<1x1x8x8xbf16, #tpu.memory_space<vmem>>, vector<1x1x8x8xbf16>
    %30 = vector.shape_cast %29 : vector<1x1x8x8xbf16> to vector<8x8xbf16>
    %31 = vector.shape_cast %28 : vector<8x8xbf16> to vector<1x1x8x8xbf16>
    tpu.vector_store %arg8[%c0_8, %c0_9, %c0_10, %c0_11], %31 {strides = array<i32>} : memref<1x1x8x8xbf16, #tpu.memory_space<vmem>>, vector<1x1x8x8xbf16>,
    %32 = arith.truncf %27 : vector<8x8xf32> to vector<8x8xbf16>
    %cst_12 = arith.constant dense<0.000000e+00> : vector<8x8xf32>
    %33 = tpu.matmul %32, %8, %cst_12 {dimension_numbers = #tpu.dot_dimension_numbers<[1], [0], [0], [1], [0, 0, 1, 1], [], []>} : vector<8x8xbf16>, vector<8x8xbf16>, vector<8x8xf32> -> vector<8x8xf32>
    %34 = arith.truncf %33 : vector<8x8xf32> to vector<8x8xbf16>
    %35 = arith.index_cast %arg1 : i32 to index
    %c0_13 = arith.constant 0 : index
    %c0_14 = arith.constant 0 : index
    %36 = vector.load %arg12[%35, %c0_13, %c0_14] : memref<4x8x8xbf16, #tpu.memory_space<vmem>>, vector<1x8x8xbf16>
    %37 = vector.shape_cast %36 : vector<1x8x8xbf16> to vector<8x8xbf16>
    %38 = vector.shape_cast %34 : vector<8x8xbf16> to vector<1x8x8xbf16>
    tpu.vector_store %arg12[%35, %c0_13, %c0_14], %38 {strides = array<i32>} : memref<4x8x8xbf16, #tpu.memory_space<vmem>>, vector<1x8x8xbf16>,
    %c3_i32 = arith.constant 3 : i32
    %39 = arith.cmpi eq, %arg1, %c3_i32 : i32
    %40 = arith.extui %39 : i1 to i32
    %c0_i32_15 = arith.constant 0 : i32
    %41 = arith.cmpi ne, %40, %c0_i32_15 : i32
    scf.if %41 {
      %c0_16 = arith.constant 0 : index
      %c0_17 = arith.constant 0 : index
      %c0_18 = arith.constant 0 : index
      %42 = vector.load %arg12[%c0_16, %c0_17, %c0_18] : memref<4x8x8xbf16, #tpu.memory_space<vmem>>, vector<1x8x8xbf16>
      %43 = vector.shape_cast %42 : vector<1x8x8xbf16> to vector<8x8xbf16>
      %c0_19 = arith.constant 0 : index
      %c0_20 = arith.constant 0 : index
      %44 = vector.load %arg13[%c0_19, %c0_20] : memref<8x32xbf16, #tpu.memory_space<vmem>>, vector<8x8xbf16>
      tpu.vector_store %arg13[%c0_19, %c0_20], %43 {strides = array<i32>} : memref<8x32xbf16, #tpu.memory_space<vmem>>, vector<8x8xbf16>,
      %c1 = arith.constant 1 : index
      %c0_21 = arith.constant 0 : index
      %c0_22 = arith.constant 0 : index
      %45 = vector.load %arg12[%c1, %c0_21, %c0_22] : memref<4x8x8xbf16, #tpu.memory_space<vmem>>, vector<1x8x8xbf16>
      %46 = vector.shape_cast %45 : vector<1x8x8xbf16> to vector<8x8xbf16>
      %c0_23 = arith.constant 0 : index
      %c8 = arith.constant 8 : index
      %47 = vector.load %arg13[%c0_23, %c8] : memref<8x32xbf16, #tpu.memory_space<vmem>>, vector<8x8xbf16>
      tpu.vector_store %arg13[%c0_23, %c8], %46 {strides = array<i32>} : memref<8x32xbf16, #tpu.memory_space<vmem>>, vector<8x8xbf16>,
      %c2 = arith.constant 2 : index
      %c0_24 = arith.constant 0 : index
      %c0_25 = arith.constant 0 : index
      %48 = vector.load %arg12[%c2, %c0_24, %c0_25] : memref<4x8x8xbf16, #tpu.memory_space<vmem>>, vector<1x8x8xbf16>
      %49 = vector.shape_cast %48 : vector<1x8x8xbf16> to vector<8x8xbf16>
      %c0_26 = arith.constant 0 : index
      %c16 = arith.constant 16 : index
      %50 = vector.load %arg13[%c0_26, %c16] : memref<8x32xbf16, #tpu.memory_space<vmem>>, vector<8x8xbf16>
      tpu.vector_store %arg13[%c0_26, %c16], %49 {strides = array<i32>} : memref<8x32xbf16, #tpu.memory_space<vmem>>, vector<8x8xbf16>,
      %c3 = arith.constant 3 : index
      %c0_27 = arith.constant 0 : index
      %c0_28 = arith.constant 0 : index
      %51 = vector.load %arg12[%c3, %c0_27, %c0_28] : memref<4x8x8xbf16, #tpu.memory_space<vmem>>, vector<1x8x8xbf16>
      %52 = vector.shape_cast %51 : vector<1x8x8xbf16> to vector<8x8xbf16>
      %c0_29 = arith.constant 0 : index
      %c24 = arith.constant 24 : index
      %53 = vector.load %arg13[%c0_29, %c24] : memref<8x32xbf16, #tpu.memory_space<vmem>>, vector<8x8xbf16>
      tpu.vector_store %arg13[%c0_29, %c24], %52 {strides = array<i32>} : memref<8x32xbf16, #tpu.memory_space<vmem>>, vector<8x8xbf16>,
      %c0_30 = arith.constant 0 : index
      %c0_31 = arith.constant 0 : index
      %54 = vector.load %arg13[%c0_30, %c0_31] : memref<8x32xbf16, #tpu.memory_space<vmem>>, vector<8x32xbf16>
      %c0_32 = arith.constant 0 : index
      %c0_33 = arith.constant 0 : index
      %55 = vector.load %arg5[%c0_32, %c0_33] : memref<32x32xbf16, #tpu.memory_space<vmem>>, vector<32x32xbf16>
      %cst_34 = arith.constant dense<0.000000e+00> : vector<8x32xf32>
      %56 = tpu.matmul %54, %55, %cst_34 {dimension_numbers = #tpu.dot_dimension_numbers<[1], [0], [0], [1], [0, 0, 1, 1], [], []>} : vector<8x32xbf16>, vector<32x32xbf16>, vector<8x32xf32> -> vector<8x32xf32>
      %c0_35 = arith.constant 0 : index
      %c0_36 = arith.constant 0 : index
      %57 = vector.load %arg6[%c0_35, %c0_36] : memref<1x32xf32, #tpu.memory_space<vmem>>, vector<1x32xf32>
      %58 = vector.shape_cast %57 : vector<1x32xf32> to vector<32xf32>
      %59 = vector.shape_cast %58 : vector<32xf32> to vector<1x32xf32>
      %60 = vector.broadcast %59 : vector<1x32xf32> to vector<8x32xf32>
      %61 = arith.addf %56, %60 : vector<8x32xf32>
      %c0_37 = arith.constant 0 : index
      %c0_38 = arith.constant 0 : index
      %c0_39 = arith.constant 0 : index
      %62 = vector.load %arg7[%c0_37, %c0_38, %c0_39] : memref<1x8x32xf32, #tpu.memory_space<vmem>>, vector<1x8x32xf32>
      %63 = vector.shape_cast %62 : vector<1x8x32xf32> to vector<8x32xf32>
      %64 = vector.shape_cast %61 : vector<8x32xf32> to vector<1x8x32xf32>
      tpu.vector_store %arg7[%c0_37, %c0_38, %c0_39], %64 {strides = array<i32>} : memref<1x8x32xf32, #tpu.memory_space<vmem>>, vector<1x8x32xf32>,
    } else {
    }
    return
  }
  func.func @transform_0(%arg0: i32, %arg1: i32) -> (i32, i32, i32) {
    %c0_i32 = arith.constant 0 : i32
    %c0_i32_0 = arith.constant 0 : i32
    %c0_i32_1 = arith.constant 0 : i32
    return %arg0, %c0_i32, %c0_i32_0 : i32, i32, i32
  }
  func.func @transform_1(%arg0: i32, %arg1: i32) -> (i32, i32) {
    %c0_i32 = arith.constant 0 : i32
    %c0_i32_0 = arith.constant 0 : i32
    %c0_i32_1 = arith.constant 0 : i32
    return %c0_i32, %c0_i32_0 : i32, i32
  }
  func.func @transform_2(%arg0: i32, %arg1: i32) -> (i32, i32) {
    %c0_i32 = arith.constant 0 : i32
    %c0_i32_0 = arith.constant 0 : i32
    %c0_i32_1 = arith.constant 0 : i32
    return %c0_i32, %c0_i32_0 : i32, i32
  }
  func.func @transform_3(%arg0: i32, %arg1: i32) -> (i32, i32) {
    %c0_i32 = arith.constant 0 : i32
    %c0_i32_0 = arith.constant 0 : i32
    %c0_i32_1 = arith.constant 0 : i32
    return %c0_i32, %c0_i32_0 : i32, i32
  }
  func.func @transform_4(%arg0: i32, %arg1: i32) -> (i32, i32) {
    %c0_i32 = arith.constant 0 : i32
    %c0_i32_0 = arith.constant 0 : i32
    %c0_i32_1 = arith.constant 0 : i32
    return %c0_i32, %c0_i32_0 : i32, i32
  }
  func.func @transform_5(%arg0: i32, %arg1: i32) -> (i32, i32, i32) {
    %c0_i32 = arith.constant 0 : i32
    %c0_i32_0 = arith.constant 0 : i32
    %c0_i32_1 = arith.constant 0 : i32
    return %arg0, %c0_i32, %c0_i32_0 : i32, i32, i32
  }
  func.func @transform_6(%arg0: i32, %arg1: i32) -> (i32, i32, i32, i32) {
    %c0_i32 = arith.constant 0 : i32
    %c0_i32_0 = arith.constant 0 : i32
    %c0_i32_1 = arith.constant 0 : i32
    return %arg0, %arg1, %c0_i32, %c0_i32_0 : i32, i32, i32, i32
  }
}

module attributes {stable_mosaic.version = 11 : i64} {
  func.func @_flava_attention_kernel(%arg0: i32, %arg1: i32, %arg2: memref<1x8x32xf32, #tpu.memory_space<vmem>>, %arg3: memref<32x96xbf16, #tpu.memory_space<vmem>>, %arg4: memref<1x96xf32, #tpu.memory_space<vmem>>, %arg5: memref<32x32xbf16, #tpu.memory_space<vmem>>, %arg6: memref<1x32xf32, #tpu.memory_space<vmem>>, %arg7: memref<1x8x32xf32, #tpu.memory_space<vmem>>, %arg8: memref<1x1x8x8xbf16, #tpu.memory_space<vmem>>, %arg9: memref<4x8x8xbf16, #tpu.memory_space<vmem>>, %arg10: memref<4x8x8xbf16, #tpu.memory_space<vmem>>, %arg11: memref<32x8xbf16, #tpu.memory_space<vmem>>, %arg12: memref<4x8x8xbf16, #tpu.memory_space<vmem>>, %arg13: memref<8x32xbf16, #tpu.memory_space<vmem>>) attributes {dimension_semantics = [#tpu.dimension_semantics<parallel>, #tpu.dimension_semantics<arbitrary>], iteration_bounds = array<i64: 2, 4>, scalar_prefetch = 0 : i64, scratch_operands = 5 : i64, tpu.core_type = #tpu.core_type<tc>, window_params = [{transform_indices = @transform_0, window_bounds = array<i64: 1, 8, 32>}, {pipeline_mode = #tpu.pipeline_mode<synchronous>, transform_indices = @transform_1, window_bounds = array<i64: 32, 96>}, {pipeline_mode = #tpu.pipeline_mode<synchronous>, transform_indices = @transform_2, window_bounds = array<i64: 1, 96>}, {pipeline_mode = #tpu.pipeline_mode<synchronous>, transform_indices = @transform_3, window_bounds = array<i64: 32, 32>}, {pipeline_mode = #tpu.pipeline_mode<synchronous>, transform_indices = @transform_4, window_bounds = array<i64: 1, 32>}, {transform_indices = @transform_5, window_bounds = array<i64: 1, 8, 32>}, {transform_indices = @transform_6, window_bounds = array<i64: 1, 1, 8, 8>}]} {
    %c0_i32 = arith.constant 0 : i32
    %0 = arith.cmpi eq, %arg1, %c0_i32 : i32
    %1 = arith.extui %0 : i1 to i32
    %c0_i32_0 = arith.constant 0 : i32
    %2 = arith.cmpi ne, %1, %c0_i32_0 : i32
    scf.if %2 {
      %c0_16 = arith.constant 0 : index
      %c0_17 = arith.constant 0 : index
      %c0_18 = arith.constant 0 : index
      %42 = vector.load %arg2[%c0_16, %c0_17, %c0_18] : memref<1x8x32xf32, #tpu.memory_space<vmem>>, vector<1x8x32xf32>
      %43 = vector.shape_cast %42 : vector<1x8x32xf32> to vector<8x32xf32>
      %44 = arith.truncf %43 : vector<8x32xf32> to vector<8x32xbf16>
      %c0_19 = arith.constant 0 : index
      %c0_20 = arith.constant 0 : index
      %45 = vector.load %arg3[%c0_19, %c0_20] : memref<32x96xbf16, #tpu.memory_space<vmem>>, vector<32x96xbf16>
      %cst_21 = arith.constant dense<0.000000e+00> : vector<8x96xf32>
      %46 = tpu.matmul %44, %45, %cst_21 {dimension_numbers = #tpu.dot_dimension_numbers<[1], [0], [0], [1], [0, 0, 1, 1], [], []>} : vector<8x32xbf16>, vector<32x96xbf16>, vector<8x96xf32> -> vector<8x96xf32>
      %c0_22 = arith.constant 0 : index
      %c0_23 = arith.constant 0 : index
      %47 = vector.load %arg4[%c0_22, %c0_23] : memref<1x96xf32, #tpu.memory_space<vmem>>, vector<1x96xf32>
      %48 = vector.shape_cast %47 : vector<1x96xf32> to vector<96xf32>
      %49 = vector.shape_cast %48 : vector<96xf32> to vector<1x96xf32>
      %50 = vector.broadcast %49 : vector<1x96xf32> to vector<8x96xf32>
      %51 = arith.addf %46, %50 : vector<8x96xf32>
      %52 = vector.extract_strided_slice %51 {offsets = [0, 32], sizes = [8, 32], strides = [1, 1]} : vector<8x96xf32> to vector<8x32xf32>
      %53 = arith.truncf %52 : vector<8x32xf32> to vector<8x32xbf16>
      %54 = tpu.transpose %53, [1, 0] : vector<8x32xbf16> -> vector<32x8xbf16>
      %c0_24 = arith.constant 0 : index
      %c0_25 = arith.constant 0 : index
      %55 = vector.load %arg11[%c0_24, %c0_25] : memref<32x8xbf16, #tpu.memory_space<vmem>>, vector<32x8xbf16>
      tpu.vector_store %arg11[%c0_24, %c0_25], %54 {strides = array<i32>} : memref<32x8xbf16, #tpu.memory_space<vmem>>, vector<32x8xbf16>,
      %56 = vector.extract_strided_slice %51 {offsets = [0, 0], sizes = [8, 8], strides = [1, 1]} : vector<8x96xf32> to vector<8x8xf32>
      %57 = arith.truncf %56 : vector<8x8xf32> to vector<8x8xbf16>
      %c0_26 = arith.constant 0 : index
      %c0_27 = arith.constant 0 : index
      %c0_28 = arith.constant 0 : index
      %58 = vector.load %arg9[%c0_26, %c0_27, %c0_28] : memref<4x8x8xbf16, #tpu.memory_space<vmem>>, vector<1x8x8xbf16>
      %59 = vector.shape_cast %58 : vector<1x8x8xbf16> to vector<8x8xbf16>
      %60 = vector.shape_cast %57 : vector<8x8xbf16> to vector<1x8x8xbf16>
      tpu.vector_store %arg9[%c0_26, %c0_27, %c0_28], %60 {strides = array<i32>} : memref<4x8x8xbf16, #tpu.memory_space<vmem>>, vector<1x8x8xbf16>,
      %61 = vector.extract_strided_slice %51 {offsets = [0, 64], sizes = [8, 8], strides = [1, 1]} : vector<8x96xf32> to vector<8x8xf32>
      %62 = arith.truncf %61 : vector<8x8xf32> to vector<8x8xbf16>
      %c0_29 = arith.constant 0 : index
      %c0_30 = arith.constant 0 : index
      %c0_31 = arith.constant 0 : index
      %63 = vector.load %arg10[%c0_29, %c0_30, %c0_31] : memref<4x8x8xbf16, #tpu.memory_space<vmem>>, vector<1x8x8xbf16>
      %64 = vector.shape_cast %63 : vector<1x8x8xbf16> to vector<8x8xbf16>
      %65 = vector.shape_cast %62 : vector<8x8xbf16> to vector<1x8x8xbf16>
      tpu.vector_store %arg10[%c0_29, %c0_30, %c0_31], %65 {strides = array<i32>} : memref<4x8x8xbf16, #tpu.memory_space<vmem>>, vector<1x8x8xbf16>,
      %66 = vector.extract_strided_slice %51 {offsets = [0, 8], sizes = [8, 8], strides = [1, 1]} : vector<8x96xf32> to vector<8x8xf32>
      %67 = arith.truncf %66 : vector<8x8xf32> to vector<8x8xbf16>
      %c1 = arith.constant 1 : index
      %c0_32 = arith.constant 0 : index
      %c0_33 = arith.constant 0 : index
      %68 = vector.load %arg9[%c1, %c0_32, %c0_33] : memref<4x8x8xbf16, #tpu.memory_space<vmem>>, vector<1x8x8xbf16>
      %69 = vector.shape_cast %68 : vector<1x8x8xbf16> to vector<8x8xbf16>
      %70 = vector.shape_cast %67 : vector<8x8xbf16> to vector<1x8x8xbf16>
      tpu.vector_store %arg9[%c1, %c0_32, %c0_33], %70 {strides = array<i32>} : memref<4x8x8xbf16, #tpu.memory_space<vmem>>, vector<1x8x8xbf16>,
      %71 = vector.extract_strided_slice %51 {offsets = [0, 72], sizes = [8, 8], strides = [1, 1]} : vector<8x96xf32> to vector<8x8xf32>
      %72 = arith.truncf %71 : vector<8x8xf32> to vector<8x8xbf16>
      %c1_34 = arith.constant 1 : index
      %c0_35 = arith.constant 0 : index
      %c0_36 = arith.constant 0 : index
      %73 = vector.load %arg10[%c1_34, %c0_35, %c0_36] : memref<4x8x8xbf16, #tpu.memory_space<vmem>>, vector<1x8x8xbf16>
      %74 = vector.shape_cast %73 : vector<1x8x8xbf16> to vector<8x8xbf16>
      %75 = vector.shape_cast %72 : vector<8x8xbf16> to vector<1x8x8xbf16>
      tpu.vector_store %arg10[%c1_34, %c0_35, %c0_36], %75 {strides = array<i32>} : memref<4x8x8xbf16, #tpu.memory_space<vmem>>, vector<1x8x8xbf16>,
      %76 = vector.extract_strided_slice %51 {offsets = [0, 16], sizes = [8, 8], strides = [1, 1]} : vector<8x96xf32> to vector<8x8xf32>
      %77 = arith.truncf %76 : vector<8x8xf32> to vector<8x8xbf16>
      %c2 = arith.constant 2 : index
      %c0_37 = arith.constant 0 : index
      %c0_38 = arith.constant 0 : index
      %78 = vector.load %arg9[%c2, %c0_37, %c0_38] : memref<4x8x8xbf16, #tpu.memory_space<vmem>>, vector<1x8x8xbf16>
      %79 = vector.shape_cast %78 : vector<1x8x8xbf16> to vector<8x8xbf16>
      %80 = vector.shape_cast %77 : vector<8x8xbf16> to vector<1x8x8xbf16>
      tpu.vector_store %arg9[%c2, %c0_37, %c0_38], %80 {strides = array<i32>} : memref<4x8x8xbf16, #tpu.memory_space<vmem>>, vector<1x8x8xbf16>,
      %81 = vector.extract_strided_slice %51 {offsets = [0, 80], sizes = [8, 8], strides = [1, 1]} : vector<8x96xf32> to vector<8x8xf32>
      %82 = arith.truncf %81 : vector<8x8xf32> to vector<8x8xbf16>
      %c2_39 = arith.constant 2 : index
      %c0_40 = arith.constant 0 : index
      %c0_41 = arith.constant 0 : index
      %83 = vector.load %arg10[%c2_39, %c0_40, %c0_41] : memref<4x8x8xbf16, #tpu.memory_space<vmem>>, vector<1x8x8xbf16>
      %84 = vector.shape_cast %83 : vector<1x8x8xbf16> to vector<8x8xbf16>
      %85 = vector.shape_cast %82 : vector<8x8xbf16> to vector<1x8x8xbf16>
      tpu.vector_store %arg10[%c2_39, %c0_40, %c0_41], %85 {strides = array<i32>} : memref<4x8x8xbf16, #tpu.memory_space<vmem>>, vector<1x8x8xbf16>,
      %86 = vector.extract_strided_slice %51 {offsets = [0, 24], sizes = [8, 8], strides = [1, 1]} : vector<8x96xf32> to vector<8x8xf32>
      %87 = arith.truncf %86 : vector<8x8xf32> to vector<8x8xbf16>
      %c3 = arith.constant 3 : index
      %c0_42 = arith.constant 0 : index
      %c0_43 = arith.constant 0 : index
      %88 = vector.load %arg9[%c3, %c0_42, %c0_43] : memref<4x8x8xbf16, #tpu.memory_space<vmem>>, vector<1x8x8xbf16>
      %89 = vector.shape_cast %88 : vector<1x8x8xbf16> to vector<8x8xbf16>
      %90 = vector.shape_cast %87 : vector<8x8xbf16> to vector<1x8x8xbf16>
      tpu.vector_store %arg9[%c3, %c0_42, %c0_43], %90 {strides = array<i32>} : memref<4x8x8xbf16, #tpu.memory_space<vmem>>, vector<1x8x8xbf16>,
      %91 = vector.extract_strided_slice %51 {offsets = [0, 88], sizes = [8, 8], strides = [1, 1]} : vector<8x96xf32> to vector<8x8xf32>
      %92 = arith.truncf %91 : vector<8x8xf32> to vector<8x8xbf16>
      %c3_44 = arith.constant 3 : index
      %c0_45 = arith.constant 0 : index
      %c0_46 = arith.constant 0 : index
      %93 = vector.load %arg10[%c3_44, %c0_45, %c0_46] : memref<4x8x8xbf16, #tpu.memory_space<vmem>>, vector<1x8x8xbf16>
      %94 = vector.shape_cast %93 : vector<1x8x8xbf16> to vector<8x8xbf16>
      %95 = vector.shape_cast %92 : vector<8x8xbf16> to vector<1x8x8xbf16>
      tpu.vector_store %arg10[%c3_44, %c0_45, %c0_46], %95 {strides = array<i32>} : memref<4x8x8xbf16, #tpu.memory_space<vmem>>, vector<1x8x8xbf16>,
    } else {
    }
    %3 = arith.index_cast %arg1 : i32 to index
    %c0 = arith.constant 0 : index
    %c0_1 = arith.constant 0 : index
    %4 = vector.load %arg9[%3, %c0, %c0_1] : memref<4x8x8xbf16, #tpu.memory_space<vmem>>, vector<1x8x8xbf16>
    %5 = vector.shape_cast %4 : vector<1x8x8xbf16> to vector<8x8xbf16>
    %6 = arith.index_cast %arg1 : i32 to index
    %c0_2 = arith.constant 0 : index
    %c0_3 = arith.constant 0 : index
    %7 = vector.load %arg10[%6, %c0_2, %c0_3] : memref<4x8x8xbf16, #tpu.memory_space<vmem>>, vector<1x8x8xbf16>
    %8 = vector.shape_cast %7 : vector<1x8x8xbf16> to vector<8x8xbf16>
    %c8_i32 = arith.constant 8 : i32
    %9 = arith.muli %arg1, %c8_i32 : i32
    %10 = tpu.assume_multiple %9, 8 : i32
    %11 = arith.index_cast %10 : i32 to index
    %c0_4 = arith.constant 0 : index
    %12 = vector.load %arg11[%11, %c0_4] : memref<32x8xbf16, #tpu.memory_space<vmem>>, vector<8x8xbf16>
    %cst = arith.constant dense<0.000000e+00> : vector<8x8xf32>
    %13 = tpu.matmul %5, %12, %cst {dimension_numbers = #tpu.dot_dimension_numbers<[1], [0], [0], [1], [0, 0, 1, 1], [], []>} : vector<8x8xbf16>, vector<8x8xbf16>, vector<8x8xf32> -> vector<8x8xf32>
    %cst_5 = arith.constant dense<0xFF800000> : vector<8xf32>
    %14 = vector.multi_reduction <maximumf>, %13, %cst_5 [1] : vector<8x8xf32> to vector<8xf32>
    %15 = vector.shape_cast %14 : vector<8xf32> to vector<8x1xf32>
    %16 = vector.broadcast %15 : vector<8x1xf32> to vector<8x8xf32>
    %17 = arith.subf %13, %16 : vector<8x8xf32>
    %18 = math.exp %17 : vector<8x8xf32>
    %cst_6 = arith.constant dense<0.000000e+00> : vector<8xf32>
    %19 = vector.multi_reduction <add>, %18, %cst_6 [1] : vector<8x8xf32> to vector<8xf32>
    %20 = vector.shape_cast %19 : vector<8xf32> to vector<8x1xf32>
    %21 = tpu.reciprocal %20 {approx = true} : vector<8x1xf32> -> vector<8x1xf32>
    %22 = arith.mulf %20, %21 : vector<8x1xf32>
    %cst_7 = arith.constant 2.000000e+00 : f32
    %23 = vector.broadcast %cst_7 : f32 to vector<8x1xf32>
    %24 = arith.subf %23, %22 : vector<8x1xf32>
    %25 = arith.mulf %21, %24 : vector<8x1xf32>
    %26 = vector.broadcast %25 : vector<8x1xf32> to vector<8x8xf32>
    %27 = arith.mulf %18, %26 : vector<8x8xf32>
    %28 = arith.truncf %27 : vector<8x8xf32> to vector<8x8xbf16>
    %c0_8 = arith.constant 0 : index
    %c0_9 = arith.constant 0 : index
    %c0_10 = arith.constant 0 : index
    %c0_11 = arith.constant 0 : index
    %29 = vector.load %arg8[%c0_8, %c0_9, %c0_10, %c0_11] : memref<1x1x8x8xbf16, #tpu.memory_space<vmem>>, vector<1x1x8x8xbf16>
    %30 = vector.shape_cast %29 : vector<1x1x8x8xbf16> to vector<8x8xbf16>
    %31 = vector.shape_cast %28 : vector<8x8xbf16> to vector<1x1x8x8xbf16>
    tpu.vector_store %arg8[%c0_8, %c0_9, %c0_10, %c0_11], %31 {strides = array<i32>} : memref<1x1x8x8xbf16, #tpu.memory_space<vmem>>, vector<1x1x8x8xbf16>,
    %32 = arith.truncf %27 : vector<8x8xf32> to vector<8x8xbf16>
    %cst_12 = arith.constant dense<0.000000e+00> : vector<8x8xf32>
    %33 = tpu.matmul %32, %8, %cst_12 {dimension_numbers = #tpu.dot_dimension_numbers<[1], [0], [0], [1], [0, 0, 1, 1], [], []>} : vector<8x8xbf16>, vector<8x8xbf16>, vector<8x8xf32> -> vector<8x8xf32>
    %34 = arith.truncf %33 : vector<8x8xf32> to vector<8x8xbf16>
    %35 = arith.index_cast %arg1 : i32 to index
    %c0_13 = arith.constant 0 : index
    %c0_14 = arith.constant 0 : index
    %36 = vector.load %arg12[%35, %c0_13, %c0_14] : memref<4x8x8xbf16, #tpu.memory_space<vmem>>, vector<1x8x8xbf16>
    %37 = vector.shape_cast %36 : vector<1x8x8xbf16> to vector<8x8xbf16>
    %38 = vector.shape_cast %34 : vector<8x8xbf16> to vector<1x8x8xbf16>
    tpu.vector_store %arg12[%35, %c0_13, %c0_14], %38 {strides = array<i32>} : memref<4x8x8xbf16, #tpu.memory_space<vmem>>, vector<1x8x8xbf16>,
    %c3_i32 = arith.constant 3 : i32
    %39 = arith.cmpi eq, %arg1, %c3_i32 : i32
    %40 = arith.extui %39 : i1 to i32
    %c0_i32_15 = arith.constant 0 : i32
    %41 = arith.cmpi ne, %40, %c0_i32_15 : i32
    scf.if %41 {
      %c0_16 = arith.constant 0 : index
      %c0_17 = arith.constant 0 : index
      %c0_18 = arith.constant 0 : index
      %42 = vector.load %arg12[%c0_16, %c0_17, %c0_18] : memref<4x8x8xbf16, #tpu.memory_space<vmem>>, vector<1x8x8xbf16>
      %43 = vector.shape_cast %42 : vector<1x8x8xbf16> to vector<8x8xbf16>
      %c0_19 = arith.constant 0 : index
      %c0_20 = arith.constant 0 : index
      %44 = vector.load %arg13[%c0_19, %c0_20] : memref<8x32xbf16, #tpu.memory_space<vmem>>, vector<8x8xbf16>
      tpu.vector_store %arg13[%c0_19, %c0_20], %43 {strides = array<i32>} : memref<8x32xbf16, #tpu.memory_space<vmem>>, vector<8x8xbf16>,
      %c1 = arith.constant 1 : index
      %c0_21 = arith.constant 0 : index
      %c0_22 = arith.constant 0 : index
      %45 = vector.load %arg12[%c1, %c0_21, %c0_22] : memref<4x8x8xbf16, #tpu.memory_space<vmem>>, vector<1x8x8xbf16>
      %46 = vector.shape_cast %45 : vector<1x8x8xbf16> to vector<8x8xbf16>
      %c0_23 = arith.constant 0 : index
      %c8 = arith.constant 8 : index
      %47 = vector.load %arg13[%c0_23, %c8] : memref<8x32xbf16, #tpu.memory_space<vmem>>, vector<8x8xbf16>
      tpu.vector_store %arg13[%c0_23, %c8], %46 {strides = array<i32>} : memref<8x32xbf16, #tpu.memory_space<vmem>>, vector<8x8xbf16>,
      %c2 = arith.constant 2 : index
      %c0_24 = arith.constant 0 : index
      %c0_25 = arith.constant 0 : index
      %48 = vector.load %arg12[%c2, %c0_24, %c0_25] : memref<4x8x8xbf16, #tpu.memory_space<vmem>>, vector<1x8x8xbf16>
      %49 = vector.shape_cast %48 : vector<1x8x8xbf16> to vector<8x8xbf16>
      %c0_26 = arith.constant 0 : index
      %c16 = arith.constant 16 : index
      %50 = vector.load %arg13[%c0_26, %c16] : memref<8x32xbf16, #tpu.memory_space<vmem>>, vector<8x8xbf16>
      tpu.vector_store %arg13[%c0_26, %c16], %49 {strides = array<i32>} : memref<8x32xbf16, #tpu.memory_space<vmem>>, vector<8x8xbf16>,
      %c3 = arith.constant 3 : index
      %c0_27 = arith.constant 0 : index
      %c0_28 = arith.constant 0 : index
      %51 = vector.load %arg12[%c3, %c0_27, %c0_28] : memref<4x8x8xbf16, #tpu.memory_space<vmem>>, vector<1x8x8xbf16>
      %52 = vector.shape_cast %51 : vector<1x8x8xbf16> to vector<8x8xbf16>
      %c0_29 = arith.constant 0 : index
      %c24 = arith.constant 24 : index
      %53 = vector.load %arg13[%c0_29, %c24] : memref<8x32xbf16, #tpu.memory_space<vmem>>, vector<8x8xbf16>
      tpu.vector_store %arg13[%c0_29, %c24], %52 {strides = array<i32>} : memref<8x32xbf16, #tpu.memory_space<vmem>>, vector<8x8xbf16>,
      %c0_30 = arith.constant 0 : index
      %c0_31 = arith.constant 0 : index
      %54 = vector.load %arg13[%c0_30, %c0_31] : memref<8x32xbf16, #tpu.memory_space<vmem>>, vector<8x32xbf16>
      %c0_32 = arith.constant 0 : index
      %c0_33 = arith.constant 0 : index
      %55 = vector.load %arg5[%c0_32, %c0_33] : memref<32x32xbf16, #tpu.memory_space<vmem>>, vector<32x32xbf16>
      %cst_34 = arith.constant dense<0.000000e+00> : vector<8x32xf32>
      %56 = tpu.matmul %54, %55, %cst_34 {dimension_numbers = #tpu.dot_dimension_numbers<[1], [0], [0], [1], [0, 0, 1, 1], [], []>} : vector<8x32xbf16>, vector<32x32xbf16>, vector<8x32xf32> -> vector<8x32xf32>
      %c0_35 = arith.constant 0 : index
      %c0_36 = arith.constant 0 : index
      %57 = vector.load %arg6[%c0_35, %c0_36] : memref<1x32xf32, #tpu.memory_space<vmem>>, vector<1x32xf32>
      %58 = vector.shape_cast %57 : vector<1x32xf32> to vector<32xf32>
      %59 = vector.shape_cast %58 : vector<32xf32> to vector<1x32xf32>
      %60 = vector.broadcast %59 : vector<1x32xf32> to vector<8x32xf32>
      %61 = arith.addf %56, %60 : vector<8x32xf32>
      %c0_37 = arith.constant 0 : index
      %c0_38 = arith.constant 0 : index
      %c0_39 = arith.constant 0 : index
      %62 = vector.load %arg7[%c0_37, %c0_38, %c0_39] : memref<1x8x32xf32, #tpu.memory_space<vmem>>, vector<1x8x32xf32>
      %63 = vector.shape_cast %62 : vector<1x8x32xf32> to vector<8x32xf32>
      %64 = vector.shape_cast %61 : vector<8x32xf32> to vector<1x8x32xf32>
      tpu.vector_store %arg7[%c0_37, %c0_38, %c0_39], %64 {strides = array<i32>} : memref<1x8x32xf32, #tpu.memory_space<vmem>>, vector<1x8x32xf32>,
    } else {
    }
    return
  }
  func.func @transform_0(%arg0: i32, %arg1: i32) -> (i32, i32, i32) {
    %c0_i32 = arith.constant 0 : i32
    %c0_i32_0 = arith.constant 0 : i32
    %c0_i32_1 = arith.constant 0 : i32
    return %arg0, %c0_i32, %c0_i32_0 : i32, i32, i32
  }
  func.func @transform_1(%arg0: i32, %arg1: i32) -> (i32, i32) {
    %c0_i32 = arith.constant 0 : i32
    %c0_i32_0 = arith.constant 0 : i32
    %c0_i32_1 = arith.constant 0 : i32
    return %c0_i32, %c0_i32_0 : i32, i32
  }
  func.func @transform_2(%arg0: i32, %arg1: i32) -> (i32, i32) {
    %c0_i32 = arith.constant 0 : i32
    %c0_i32_0 = arith.constant 0 : i32
    %c0_i32_1 = arith.constant 0 : i32
    return %c0_i32, %c0_i32_0 : i32, i32
  }
  func.func @transform_3(%arg0: i32, %arg1: i32) -> (i32, i32) {
    %c0_i32 = arith.constant 0 : i32
    %c0_i32_0 = arith.constant 0 : i32
    %c0_i32_1 = arith.constant 0 : i32
    return %c0_i32, %c0_i32_0 : i32, i32
  }
  func.func @transform_4(%arg0: i32, %arg1: i32) -> (i32, i32) {
    %c0_i32 = arith.constant 0 : i32
    %c0_i32_0 = arith.constant 0 : i32
    %c0_i32_1 = arith.constant 0 : i32
    return %c0_i32, %c0_i32_0 : i32, i32
  }
  func.func @transform_5(%arg0: i32, %arg1: i32) -> (i32, i32, i32) {
    %c0_i32 = arith.constant 0 : i32
    %c0_i32_0 = arith.constant 0 : i32
    %c0_i32_1 = arith.constant 0 : i32
    return %arg0, %c0_i32, %c0_i32_0 : i32, i32, i32
  }
  func.func @transform_6(%arg0: i32, %arg1: i32) -> (i32, i32, i32, i32) {
    %c0_i32 = arith.constant 0 : i32
    %c0_i32_0 = arith.constant 0 : i32
    %c0_i32_1 = arith.constant 0 : i32
    return %arg0, %arg1, %c0_i32, %c0_i32_0 : i32, i32, i32, i32
  }
}

</mosaic_0001>

<bundles_post_ra>
// kernel: tpu_custom_call.1
= control target key start
LH: loop header
LB: loop body
LE: loop exit
PB: predicated region body
PF: predicated region fallthrough
CT: control target
= control target key end

     0   :  { %s1572_s0 = inlined_call_operand.hbm [shape: f32[2,8,32], index: 0, kind: input, shape index: {}]   ;;  %s1573_s1 = inlined_call_operand.hbm [shape: bf16[32,96], index: 1, kind: input, shape index: {}]   ;;  %s1574_s2 = inlined_call_operand.vmem [shape: f32[1,96], index: 2, kind: input, shape index: {}]   ;;  %s1575_s3 = inlined_call_operand.hbm [shape: bf16[32,32], index: 3, kind: input, shape index: {}]   ;;  %s1576_s4 = inlined_call_operand.vmem [shape: f32[1,32], index: 4, kind: input, shape index: {}]   ;;  %s1577_s5 = inlined_call_operand.hbm [shape: f32[2,8,32], index: 5, kind: output, shape index: {0}]   ;;  %s1578_s6 = inlined_call_operand.hbm [shape: bf16[2,4,8,8], index: 6, kind: output, shape index: {1}]  }
   0x1   :  { %1589 = sst [smem:[#allocation28_spill]] %s1572_s0 }
   0x2   :  { %1590 = sst [smem:[#allocation29_spill]] %s1573_s1 }
   0x3   :  { %1591 = sst [smem:[#allocation30_spill]] %s1574_s2 }
   0x4   :  { %1592 = sst [smem:[#allocation31_spill]] %s1575_s3 }
   0x5   :  { %12 = vsyncpa [#allocation8], 0 }
   0x6   :  { %14 = vsyncpa [#allocation8 + $0x1], 0 }
   0x7   :  { %15 = vsyncpa [#allocation11], 0 }
   0x8   :  { %16 = vsyncpa [#allocation9], 0 }
   0x9   :  { %18 = vsyncpa [#allocation9 + $0x1], 0 }
   0xa   :  { %19 = vsyncpa [#allocation15], 0 }
   0xb   :  { %21 = vsyncpa [#allocation15 + $0x1], 0  ;;  %s1268_s21 = smov 0   ;;  %s1270_s22 = smov 0  }
   0xc   :  { %s1272_s23 = smov 0   ;;  %s1274_s24 = smov 0  }
   0xd   :  { %s1276_s25 = smov 0   ;;  %s1278_s26 = smov 0  }
   0xe   :  { %s1280_s27 = smov 0   ;;  %s1282_s28 = smov 0  }
   0xf   :  { %s1284_s29 = smov 0   ;;  %s1286_s30 = smov 0  }
  0x10   :  { %s1288_s7 = smov 0  }
  0x11 LB: > { %1593 = sst [smem:[#allocation20_spill]] %s1176_s21  ;;  %s1579_s8 = sadd.s32 4294967295, %s1216_s7   ;;  %s1216_s7 = sphi %s1288_s7, %s27_s7   ;;  %s1212_s30 = sphi %s1286_s30, %s1626_s30   ;;  %s1208_s29 = sphi %s1284_s29, %s1625_s29   ;;  %s1204_s28 = sphi %s1282_s28, %s1624_s28   ;;  %s1200_s27 = sphi %s1280_s27, %s1623_s27   ;;  %s1196_s26 = sphi %s1278_s26, %s1632_s26   ;;  %s1192_s25 = sphi %s1276_s25, %s1631_s25   ;;  %s1188_s24 = sphi %s1274_s24, %s1630_s24   ;;  %s1184_s23 = sphi %s1272_s23, %s1629_s23   ;;  %s1180_s22 = sphi %s1270_s22, %s1628_s22   ;;  %s1176_s21 = sphi %s1268_s21, %s1627_s21  }
  0x12   : > { %1594 = sst [smem:[#allocation21_spill]] %s1188_s24  ;;  %p770_p0 = scmp.ge.s32.totalorder %s1216_s7, 1 }
  0x13   : > { %1595 = sst [smem:[#allocation22_spill]] %s1208_s29  ;;  %p1327_p1 = scmp.eq.s32.totalorder %s1579_s8, 0 }
  0x14   : > { %1596 = sst [smem:[#allocation23_spill]] %s1212_s30  ;;  %p208_p2 = scmp.lt.s32.totalorder %s1216_s7, 9 }
  0x15   : > { %s1598_s1 = sld [smem:[#allocation29_spill]]  ;;  %s1218_s14 = smov [#allocation10]  }
  0x16   : > { %p1335_p3 = pnand %p770_p0, %p208_p2  ;;  %s221_s15 = sshll.u32 %s1218_s14, 4  ;;  %s222_s15 = int_to_ptr.vmem [resolvable:$true] %s221_s15 }
  0x17   : > { %s1600_s3 = sld [smem:[#allocation31_spill]]  ;;  %s1219_s19 = smov 64  }
  0x18   : > { %p834_p4 = pneg %p1335_p3  ;;  %s1220_s20 = smov 4  }
  0x19   : > { %s1221_s10 = smov [#allocation12]   ;;  %s36_s14 = sadd.s32 1, %s1208_s29 }
  0x1a   : > { %p835_p5 = pnand %p834_p4, %p1327_p1  ;;  %s238_s11 = sshll.u32 %s1221_s10, 4  ;;  %s239_s11 = int_to_ptr.vmem [resolvable:$true] %s238_s11 }
  0x1b   : > { %s219_s12 = sshll.u32 %s1598_s1, 4  ;;  %p37_p6 = scmp.ge.s32.totalorder %s36_s14, 4  ;;  %s220_s12 = int_to_ptr.hbm [resolvable:$true] %s219_s12 }
  0x1c   : > { %837 = dma.hbm_to_vmem [thread:$0]  (!%p835_p5), %s220_s12, 256, %s222_s15, [#allocation11], %s1219_s19, %s1219_s19, %s1220_s20  }
  0x1d   : > { %s236_s18 = sshll.u32 %s1600_s3, 4  ;;  %s39_s16 = sadd.s32 1, %s1212_s30  ;;  %s237_s18 = int_to_ptr.hbm [resolvable:$true] %s236_s18 }
  0x1e   : > { %840 = dma.hbm_to_vmem [thread:$0]  (!%p835_p5), %s237_s18, 256, %s239_s11, [#allocation11], %s1219_s19, %s1219_s19, %s1220_s20  }
  0x1f   : > { %s769_s17 = sadd.s32 4294967294, %s1216_s7   ;;  %s46_s8 = sadd.s32 1, %s1196_s26 }
  0x20   : > { %s1634_s14 = smov (%p37_p6, %s36_s14), 0  ;;  %s1636_s16 = smov (!%p37_p6, %s39_s16), %s1212_s30 }
  0x21   : > { %1601 = sst [smem:[#allocation24_spill]] %s1634_s14  ;;  %p53_p7 = scmp.ne.s32.totalorder %s1196_s26, %s1192_s25 }
  0x22   : > { %p59_p8 = scmp.ne.s32.totalorder %s1192_s25, %s1188_s24  ;;  %p41_p9 = scmp.ge.s32.totalorder %s1636_s16, 2 }
  0x23   : > { %s1602_s12 = sadd.s32 4294967295, %s1216_s7   ;;  %p54_p11 = scmp.eq.s32.totalorder %s1216_s7, 0 }
  0x24   : > { %p1359_p10 = scmp.eq.s32.totalorder %s1602_s12, 7  ;;  %p1366_p12 = por %p1327_p1, %p59_p8 }
  0x25   : > { %s1638_s16 = smov (%p41_p9, %s1636_s16), 0  ;;  %p1381_p0 = scmp.eq.s32.totalorder %s769_s17, 7 }
  0x26   : > { %1605 = sst [smem:[#allocation25_spill]] %s1638_s16  ;;  %p1377_p13 = por %p1359_p10, %p53_p7 }
  0x27   : > { %s43_s10 = ssub.s32 %s1212_s30, %s1638_s16  ;;  %s180_s11 = ssub.s32 %s1208_s29, %s1634_s14 }
  0x28   : > { %s1606_s19 = scalar_select %p1377_p13, 1, 0 }
  0x29   : > { %p44_p2 = scmp.eq.s32.totalorder %s43_s10, 0  ;;  %p1391_p4 = por %p1381_p0, %p59_p8 }
  0x2a   : > { %s181_s1 = sor.u32 %s180_s11, %s43_s10  ;;  %s184_s3 = sadd.s32 1, %s1184_s23 }
  0x2b   : > { %s1397_s24 = scalar_select %p44_p2, %s1196_s26, %s46_s8  }
  0x2c   : > { %p182_p5 = scmp.eq.s32.totalorder %s181_s1, 0  ;;  %p194_p6 = scmp.ne.s32.totalorder %s1184_s23, %s1180_s22 }
  0x2d   : > { %1609 = sst [smem:[#allocation26_spill]] %s1397_s24  ;;  %p1406_p9 = por %p54_p11, %p53_p7 }
  0x2e   : > { %p200_p13 = scmp.ne.s32.totalorder %s1180_s22, %s1176_s21  ;;  %p1417_p8 = por %p194_p6, %p1359_p10 }
  0x2f   : > { %s1413_s16 = scalar_select %p182_p5, %s1184_s23, %s184_s3  }
  0x30   : > { %p1423_p2 = por %p200_p13, %p1381_p0  ;;  %s255_s1 = sand.u32 1, %s1196_s26  }
  0x31   : > { %1611 = sst [smem:[#allocation27_spill]] %s1413_s16  ;;  %s775_s10 = sshll.u32 %s1212_s30, 3 }
  0x32   : > { %p854_p7 = scmp.lt.s32.totalorder %s1216_s7, 8  ;;  %s774_s11 = sshll.u32 %s255_s1, 3 }
  0x33   : > { %s1614_s0 = sld [smem:[#allocation28_spill]]  ;;  %s259_s16 = scalar_lea.vmem [#allocation7], %s774_s11 }
  0x34   : > { %s267_s15 = sshll.u32 %s259_s16, 4  ;;  %p842_p10 = pnand %p854_p7, %p1406_p9  ;;  %s268_s15 = int_to_ptr.vmem [resolvable:$true] %s267_s15 }
  0x35   : > { %s256_s20 = scalar_lea.sflag [#allocation8], %s255_s1  ;;  %s1438_s30 = sand.u32 (!%p1335_p3), 1, %s1192_s25  }
  0x36   : > { %s777_s24 = sshll.u32 (!%p1335_p3), %s1438_s30, 3  ;;  %s279_s29 = scalar_lea.sflag (!%p1335_p3), [#allocation8], %s1438_s30 }
  0x37   : > { %276 = sbr.rel (%p1335_p3) target bundleno = 1353 (0x549), region = 40 }
  0x39   : > { %s263_s21 = scalar_lea.hbm %s1614_s0, %s775_s10 }
  0x3a   : > { %s265_s3 = sshll.u32 %s263_s21, 4  ;;  %s282_s21 = scalar_lea.vmem (!%p1335_p3), [#allocation7], %s777_s24  ;;  %s266_s3 = int_to_ptr.hbm [resolvable:$true] %s265_s3 }
  0x3b   : > { %844 = dma.hbm_to_vmem [thread:$0]  (!%p842_p10), %s266_s3, 128, %s268_s15, %s256_s20  }
  0x3c   : > { %1159 = dma.done.wait (%p1366_p12), %s279_s29, 128  }
  0x3d   : > { %1161 = vsyncadd (%p1366_p12), %s279_s29, 4294967168 }
  0x3e   : > { %1163 = dma.done.wait (%p1327_p1), [#allocation11], 512  }
  0x3f   : > { %1165 = vsyncadd (%p1327_p1), [#allocation11], 4294966784  ;;  %s1587_s13 = sand.u32 1, %s1180_s22   ;;  %s1455_s17 = scalar_lea.vmem [#allocation13], %s777_s24 }
  0x40   : > { %s1453_s16 = sshll.u32 %s1587_s13, 2  ;;  %p782_p3 = scmp.ne.s32.totalorder %s1200_s27, 0 }
  0x41   : > { %s1588_s1 = scalar_lea.vmem [#allocation14], %s1453_s16  ;;  %s1615_s2 = sld [smem:[#allocation30_spill]] (!%p782_p3) }
  0x42   : > { %331 = sbr.rel (%p782_p3) target bundleno = 520 (0x208), region = 56  ;;  %s1222_s10 = smov (!%p782_p3), 56  }
  0x43   : > { %s1223_s11 = smov (!%p782_p3), 64   ;;  %s1224_s3 = smov (!%p782_p3), 96  }
  0x44   : > { %s1225_s15 = smov (!%p782_p3), 112   ;;  %s1226_s20 = smov (!%p782_p3), 120  }
  0x45   : > { %s1227_s24 = smov (!%p782_p3), 104   ;;  %s1228_s29 = smov (!%p782_p3), 48  }
  0x47   : > { %v817_v0 = vld [vmem:[#allocation10 + $0x8] sm:$0xff]  ;;  %v816_v1 = vld [vmem:[#allocation10] sm:$0xff]  ;;  %v332_v2 = vld [vmem:[%s282_s21] sm:$0xff]  ;;  %vm354_vm0 = vcmask 261120   ;;  %vm406_vm1 = vcmask 60416   ;;  %s1229_s21 = smov 40  }
  0x48   : > { %364 = vmatpush.bf16.msra.mxu0 %v817_v0  ;;  %v333_v3 = vpack.c.bf16 %v332_v2, %v332_v2  ;;  %v962_v4 = vld [vmem:[%s1615_s2] ss:$0 sm:$0xff] }
  0x4c   : > { %365 = vmatpush.bf16.msra.mxu0 %v816_v1 }
  0x4f   : > { %791 = vmatmul.msk.bf16.vlgmr.msra.gmra.mxu0 %vm354_vm0, %v333_v3 }
  0xcc   : > { %v367_v5 = vpop.f32.mrf.mxu0 }
  0xcd   : > { %v368_v6 = vadd.f32 %v962_v4, %v367_v5 }
  0xcf   : > { %v371_v7 = vpack.c.bf16 %v368_v6, %v368_v6 }
  0xd1   : > { %421 = vrot.lane.b32.xlu2 %v371_v7, %s1222_s10  ;;  %412 = vrot.lane.b32.xlu1 %v371_v7, %s1223_s11  ;;  %411 = vst.msk [vmem:[#allocation2] sm:$0xf] %vm406_vm1, %v371_v7 }
  0xd2   : > { %373 = vrot.lane.b32.xlu0 %v371_v7, %s1224_s3 }
  0xd4   : > { %v369_v8 = vpop.f32.mrf.mxu0 }
  0xd9   : > { %426 = vrot.lane.b32.xlu2 %v371_v7, %s1225_s15  ;;  %416 = vrot.lane.b32.xlu1 %v371_v7, %s1226_s20 }
  0xe1   : > { %436 = vrot.lane.b32.xlu2 %v371_v7, %s1227_s24  ;;  %431 = vrot.lane.b32.xlu1 %v371_v7, %s1228_s29 }
  0xe9   : > { %441 = vrot.lane.b32.xlu1 %v371_v7, %s1229_s21 }
 0x12b   : > { %v422_v9 = vpop.permute.xlu2 %421 }
 0x12c   : > { %425 = vst.msk [vmem:[#allocation3 + $0x4] sm:$0xf] %vm406_vm1, %v422_v9 }
 0x133   : > { %v427_v10 = vpop.permute.xlu2 %426 }
 0x134   : > { %430 = vst.msk [vmem:[#allocation2 + $0x8] sm:$0xf] %vm406_vm1, %v427_v10 }
 0x13b   : > { %v437_v11 = vpop.permute.xlu2 %436 }
 0x13c   : > { %440 = vst.msk [vmem:[#allocation2 + $0xc] sm:$0xf] %vm406_vm1, %v437_v11 }
 0x143   : > { %v413_v12 = vpop.permute.xlu1 %412 }
 0x144   : > { %415 = vst.msk [vmem:[#allocation3] sm:$0xf] %vm406_vm1, %v413_v12  ;;  %v374_v13 = vpop.permute.xlu0 %373 }
 0x145   : > { %376 = vxpose.xlu0.c.b16.start.end [1/1] (short) (narrow) %v374_v13, 32 }
 0x14b   : > { %v417_v14 = vpop.permute.xlu1 %416 }
 0x14c   : > { %420 = vst.msk [vmem:[#allocation2 + $0x4] sm:$0xf] %vm406_vm1, %v417_v14 }
 0x153   : > { %v432_v15 = vpop.permute.xlu1 %431 }
 0x154   : > { %435 = vst.msk [vmem:[#allocation3 + $0x8] sm:$0xf] %vm406_vm1, %v432_v15 }
 0x15b   : > { %v442_v16 = vpop.permute.xlu1 %441 }
 0x15c   : > { %445 = vst.msk [vmem:[#allocation3 + $0xc] sm:$0xf] %vm406_vm1, %v442_v16 }
 0x1f1   : > { %v384_v17 = vpop.trf.xlu0 }
 0x1f2   : > { %v394_v18 = vunpack.c.l.b16 %v384_v17  ;;  %v395_v19 = vunpack.c.h.b16 %v384_v17 }
 0x1f4   : > { %v398_v20 = vpack.c.b16 %v394_v18, %v394_v18  ;;  %v399_v21 = vpack.c.b16 %v395_v19, %v395_v19 }
 0x1f6   : > { %407 = vst.msk [vmem:[#allocation4] sm:$0xf] %vm406_vm1, %v398_v20 }
 0x1f7   : > { %408 = vst.msk [vmem:[#allocation4 + $0x4] sm:$0xf] %vm406_vm1, %v399_v21 }
 0x201   : > { %v385_v22 = vpop.trf.xlu0 }
 0x202   : > { %v396_v23 = vunpack.c.l.b16 %v385_v22  ;;  %v397_v24 = vunpack.c.h.b16 %v385_v22 }
 0x204   : > { %v400_v25 = vpack.c.b16 %v396_v23, %v396_v23  ;;  %v401_v26 = vpack.c.b16 %v397_v24, %v397_v24 }
 0x206   : > { %409 = vst.msk [vmem:[#allocation4 + $0x8] sm:$0xf] %vm406_vm1, %v400_v25 }
 0x207   : > { %410 = vst.msk [vmem:[#allocation4 + $0xc] sm:$0xf] %vm406_vm1, %v401_v26 }
 0x208 PF: > { %s794_s9 = sshll.u32 %s1200_s27, 3  ;;  %s1476_s18 = sshll.u32 %s1200_s27, 2  ;;  %vm462_vm2 = vcmask 1043456   ;;  %vm458_vm3 = vcmask 64512   ;;  %vm494_vm4 = vcmask 60416  }
 0x209   : > { %s453_s10 = sshra.s32 %s794_s9, 3  ;;  %s447_s15 = scalar_lea.vmem [#allocation2], %s1476_s18 }
 0x20a   : > { %s795_s11 = sshll.u32 %s453_s10, 2  ;;  %v448_v29 = vld [vmem:[%s447_s15] sm:$0xf]  ;;  %s450_s20 = scalar_lea.vmem [#allocation3], %s1476_s18 }
 0x20b   : > { %s456_s3 = scalar_lea.vmem [#allocation4], %s795_s11  ;;  %v451_v38 = vld [vmem:[%s450_s20] sm:$0xf]  ;;  %s517_s24 = scalar_lea.vmem [#allocation5], %s1476_s18 }
 0x20c   : > { %v500_v39 = vsel %vm462_vm2, %v451_v38, 0  ;;  %p799_p1 = scmp.ne.s32.totalorder %s1200_s27, 3 }
 0x20d   : > { %509 = vmatpush.bf16.msra.mxu1 %v500_v39  ;;  %s1230_s29 = smov (!%p799_p1), 8   ;;  %s1231_s21 = smov (!%p799_p1), 24  }
 0x20e   : > { %v457_v27 = vld [vmem:[%s456_s3] sm:$0xf]  ;;  %s1232_s9 = smov (!%p799_p1), 16  }
 0x20f   : > { %v464_v28 = vsel %vm462_vm2, %v457_v27, 0 }
 0x210   : > { %473 = vmatpush.bf16.msra.mxu0 %v464_v28 }
 0x213   : > { %796 = vmatmul.msk.bf16.vlgmr.msra.gmra.mxu0 %vm458_vm3, %v448_v29 }
 0x290   : > { %v475_v30 = vpop.f32.mrf.mxu0 }
 0x291   : > { %v479_v31 = vsel %vm458_vm3, %v475_v30, -inf }
 0x292   : > { %480 = vmax.xlane.f32.xlu0 %v479_v31 }
 0x298   : > { %v477_v32 = vpop.f32.mrf.mxu0 }
 0x305   : > { %v481_v33 = vpop.xlane.xlu0 %480 }
 0x306   : > { %v482_v34 = vsub.f32 %v475_v30, %v481_v33 }
 0x308   : > { %v483_v35 = vmul.f32 1.442695, %v482_v34 }
 0x30a   : > { %963 = vpow2.f32 %v483_v35 }
 0x310   : > { %v964_v36 = vpop.eup %963 }
 0x311   : > { %v485_v37 = vsel %vm458_vm3, %v964_v36, 0.0 }
 0x312   : > { %486 = vadd.xlane.f32.xlu0 %v485_v37 }
 0x385   : > { %v487_v40 = vpop.xlane.xlu0 %486 }
 0x386   : > { %965 = vrcp.f32 %v487_v40 }
 0x38c   : > { %v966_v41 = vpop.eup %965 }
 0x38d   : > { %v489_v42 = vmul.f32 %v966_v41, %v487_v40 }
 0x38f   : > { %v490_v43 = vsub.f32 2.0, %v489_v42 }
 0x391   : > { %v491_v44 = vmul.f32 %v966_v41, %v490_v43 }
 0x393   : > { %v492_v45 = vmul.f32 %v964_v36, %v491_v44 }
 0x395   : > { %v493_v46 = vpack.c.bf16 %v492_v45, %v492_v45 }
 0x397   : > { %495 = vst.msk [vmem:[%s1588_s1] sm:$0xf] %vm494_vm4, %v493_v46  ;;  %797 = vmatmul.msk.bf16.vlgmr.msra.gmra.mxu1 %vm458_vm3, %v493_v46 }
 0x414   : > { %v511_v47 = vpop.f32.mrf.mxu1 }
 0x415   : > { %v515_v48 = vpack.c.bf16 %v511_v47, %v511_v47 }
 0x417   : > { %518 = vst.msk [vmem:[%s517_s24] sm:$0xf] %vm494_vm4, %v515_v48 }
 0x418   : > { %522 = sbr.rel (%p799_p1) target bundleno = 1321 (0x529), region = 60 }
 0x41c   : > { %v513_v49 = vpop.f32.mrf.mxu1 }
 0x41d   : > { %v819_v54 = vld [vmem:[#allocation12 + $0x8] sm:$0xff]  ;;  %v818_v55 = vld [vmem:[#allocation12] sm:$0xff]  ;;  %vm531_vm5 = vcmask 126016   ;;  %vm539_vm6 = vcmask 191616   ;;  %vm547_vm7 = vcmask 257216   ;;  %vm570_vm8 = vcmask 261120  }
 0x41e   : > { %v526_v50 = vld [vmem:[#allocation5 + $0x4] sm:$0xf]  ;;  %v542_v51 = vld [vmem:[#allocation5 + $0xc] sm:$0xf]  ;;  %v534_v52 = vld [vmem:[#allocation5 + $0x8] sm:$0xf]  ;;  %580 = vmatpush.bf16.msra.mxu0 %v819_v54 }
 0x41f   : > { %528 = vrot.lane.b32.xlu0 %v526_v50, %s1230_s29  ;;  %544 = vrot.lane.b32.xlu1 %v542_v51, %s1231_s21  ;;  %v523_v53 = vld [vmem:[#allocation5] sm:$0xf]  ;;  %v967_v60 = vld [vmem:[%s1576_s4] ss:$0 sm:$0xff] }
 0x420   : > { %524 = vst.msk [vmem:[#allocation6] sm:$0xf] %vm494_vm4, %v523_v53 }
 0x422   : > { %581 = vmatpush.bf16.msra.mxu0 %v818_v55 }
 0x427   : > { %536 = vrot.lane.b32.xlu0 %v534_v52, %s1232_s9 }
 0x491   : > { %v529_v56 = vpop.permute.xlu0 %528  ;;  %v545_v57 = vpop.permute.xlu1 %544 }
 0x492   : > { %532 = vst.msk [vmem:[#allocation6] sm:$0xf] %vm531_vm5, %v529_v56 }
 0x499   : > { %v537_v58 = vpop.permute.xlu0 %536 }
 0x49a   : > { %540 = vst.msk [vmem:[#allocation6] sm:$0xf] %vm539_vm6, %v537_v58 }
 0x49b   : > { %548 = vst.msk [vmem:[#allocation6] sm:$0xf] %vm547_vm7, %v545_v57 }
 0x4a2   : > { %v549_v59 = vld [vmem:[#allocation6] sm:$0xf] }
 0x4a3   : > { %808 = vmatmul.msk.bf16.vlgmr.msra.gmra.mxu0 %vm570_vm8, %v549_v59 }
 0x520   : > { %v583_v61 = vpop.f32.mrf.mxu0 }
 0x521   : > { %v584_v62 = vadd.f32 %v967_v60, %v583_v61 }
 0x523   : > { %587 = vst.msk [vmem:[%s1455_s17] sm:$0xff] %vm570_vm8, %v584_v62 }
 0x528   : > { %v585_v63 = vpop.f32.mrf.mxu0 }
 0x529 PF: > { %s811_s11 = sshll.u32 %s1204_s28, 3  ;;  %s606_s24 = sshll.u32 %s1455_s17, 4  ;;  %s607_s24 = int_to_ptr.vmem [resolvable:$true] %s606_s24 }
 0x52a   : > { %s604_s20 = scalar_lea.hbm %s1577_s5, %s811_s11  ;;  %s589_s21 = scalar_lea.sflag [#allocation9], %s1438_s30 }
 0x52b   : > { %s608_s29 = sshll.u32 %s604_s20, 4  ;;  %p1616_p12 = scmp.ne.s32.totalorder %s1606_s19, 0  ;;  %s609_s29 = int_to_ptr.hbm [resolvable:$true] %s608_s29 }
 0x52c   : > { %s1072_s9 = sshra.s32 %s609_s29, 4  ;;  %s1078_s1 = scalar_lea.hbm %s1577_s5, 16  ;;  %s1073_s9 = int_to_ptr.hbm [resolvable:$true] %s1072_s9 }
 0x52d   : > { %s1074_s18 = scalar_lea.hbm %s1073_s9, 8  ;;  %p1079_p5 = scmp.lt.s32.totalorder %s1073_s9, %s1577_s5 }
 0x52e   : > { %p1075_p11 = scmp.ne.s32.totalorder %s1073_s9, %s1074_s18  ;;  %p1080_p6 = scmp.lt.s32.totalorder %s1078_s1, %s1074_s18 }
 0x530   : > { %p1076_p13 = pnand %p1075_p11, %p1616_p12  ;;  %p1081_p9 = por %p1080_p6, %p1079_p5 }
 0x532   : > { %p1077_p0 = pneg %p1076_p13 }
 0x534   : > { %p1082_p7 = pnand %p1081_p9, %p1077_p0 }
 0x536   : > { %1085 = shalt.err (!%p1082_p7)
}
 0x537   : > { %830 = dma.vmem_to_hbm [thread:$0]  (%p1616_p12), %s607_s24, 128, %s609_s29, %s589_s21  }
 0x538   : > { %s812_s30 = sshll.u32 %s1204_s28, 2  ;;  %s1617_s17 = scalar_lea.vmem [#allocation14], %s1453_s16 }
 0x539   : > { %s622_s13 = sshll.u32 %s1617_s17, 4  ;;  %s618_s11 = sadd.s32 %s1200_s27, %s812_s30  ;;  %s623_s13 = int_to_ptr.vmem [resolvable:$true] %s622_s13 }
 0x53a   : > { %s813_s3 = sshll.u32 %s618_s11, 2  ;;  %s1618_s20 = sand.u32 1, %s1180_s22  }
 0x53b   : > { %s620_s2 = scalar_lea.hbm %s1578_s6, %s813_s3  ;;  %s594_s19 = scalar_lea.sflag [#allocation15], %s1618_s20 }
 0x53c   : > { %s624_s1 = sshll.u32 %s620_s2, 4  ;;  %s1106_s27 = scalar_lea.hbm %s1578_s6, 32  ;;  %s625_s1 = int_to_ptr.hbm [resolvable:$true] %s624_s1 }
 0x53d   : > { %s1100_s9 = sshra.s32 %s625_s1, 4  ;;  %s1101_s9 = int_to_ptr.hbm [resolvable:$true] %s1100_s9 }
 0x53e   : > { %s1102_s18 = scalar_lea.hbm %s1101_s9, 4  ;;  %p1107_p11 = scmp.lt.s32.totalorder %s1101_s9, %s1578_s6 }
 0x53f   : > { %p1103_p10 = scmp.ne.s32.totalorder %s1101_s9, %s1102_s18  ;;  %p1108_p12 = scmp.lt.s32.totalorder %s1106_s27, %s1102_s18 }
 0x541   : > { %p1104_p3 = pnand %p1103_p10, %p1417_p8  ;;  %p1109_p13 = por %p1108_p12, %p1107_p11 }
 0x543   : > { %p1105_p1 = pneg %p1104_p3 }
 0x545   : > { %p1110_p0 = pnand %p1109_p13, %p1105_p1 }
 0x547   : > { %1113 = shalt.err (!%p1110_p0)
}
 0x548   : > { %831 = dma.vmem_to_hbm [thread:$0]  (%p1417_p8), %s623_s13, 64, %s625_s1, %s594_s19  }
 0x549 PF: > { %s1619_s21 = sld [smem:[#allocation21_spill]]  ;;  %p857_p5 = scmp.ge.s32.totalorder %s1216_s7, 2 }
 0x54b   : > { %p846_p6 = pnand %p857_p5, %p1391_p4 }
 0x54d   : > { %p847_p9 = pneg %p846_p6 }
 0x54f   : > { %s636_s10 = sand.u32 1, %s1619_s21  }
 0x550   : > { %s637_s30 = scalar_lea.sflag [#allocation9], %s636_s10 }
 0x551   : > { %1167 = dma.done.wait (%p847_p9), %s637_s30, 128  }
 0x552   : > { %1169 = vsyncadd (%p847_p9), %s637_s30, 4294967168  ;;  %s1620_s17 = sld [smem:[#allocation20_spill]]  ;;  %p849_p7 = pnand %p857_p5, %p1423_p2 }
 0x554   : > { %p850_p10 = pneg %p849_p7 }
 0x558   : > { %s646_s11 = sand.u32 1, %s1620_s17  }
 0x559   : > { %s647_s14 = scalar_lea.sflag [#allocation15], %s646_s11 }
 0x55a   : > { %1171 = dma.done.wait (%p850_p10), %s647_s14, 64  }
 0x55b   : > { %1173 = vsyncadd (%p850_p10), %s647_s14, 4294967232  ;;  %s27_s7 = sadd.s32 1, %s1216_s7   ;;  %s1621_s12 = sld [smem:[#allocation27_spill]] }
 0x55c   : > { %p24_p8 = scmp.ge.s32.totalorder %s27_s7, 10   ;;  %s1622_s13 = sld [smem:[#allocation26_spill]] }
 0x55d   : > { %s1623_s27 = sld [smem:[#allocation22_spill]]  ;;  %s1627_s21 = smov %s1180_s22 }
 0x55e   : > { %s1624_s28 = sld [smem:[#allocation23_spill]]  ;;  %s1628_s22 = smov %s1184_s23 }
 0x55f   : > { %s1625_s29 = sld [smem:[#allocation24_spill]]  ;;  %s1630_s24 = smov %s1192_s25 }
 0x560   : > { %s1626_s30 = sld [smem:[#allocation25_spill]]  ;;  %s1631_s25 = smov %s1196_s26 }
 0x561   : > { %s1629_s23 = smov %s1621_s12  ;;  %26 = sbr.rel (!%p24_p8) target bundleno = 17 (0x11), region = 131 }
 0x562   : > { %s1632_s26 = smov %s1622_s13 }
 0x566   :  { %653 = vsyncpa [#allocation8], 1 }
 0x567   :  { %655 = vsyncpa [#allocation8 + $0x1], 1 }
 0x568   :  { %656 = vsyncpa [#allocation11], 1 }
 0x569   :  { %657 = vsyncpa [#allocation9], 1 }
 0x56a   :  { %659 = vsyncpa [#allocation9 + $0x1], 1 }
 0x56b   :  { %660 = vsyncpa [#allocation15], 1 }
 0x56c   :  { %662 = vsyncpa [#allocation15 + $0x1], 1 }

// kernel: tpu_custom_call.1
= control target key start
LH: loop header
LB: loop body
LE: loop exit
PB: predicated region body
PF: predicated region fallthrough
CT: control target
= control target key end

     0   :  { %s1572_s0 = inlined_call_operand.hbm [shape: f32[2,8,32], index: 0, kind: input, shape index: {}]   ;;  %s1573_s1 = inlined_call_operand.hbm [shape: bf16[32,96], index: 1, kind: input, shape index: {}]   ;;  %s1574_s2 = inlined_call_operand.vmem [shape: f32[1,96], index: 2, kind: input, shape index: {}]   ;;  %s1575_s3 = inlined_call_operand.hbm [shape: bf16[32,32], index: 3, kind: input, shape index: {}]   ;;  %s1576_s4 = inlined_call_operand.vmem [shape: f32[1,32], index: 4, kind: input, shape index: {}]   ;;  %s1577_s5 = inlined_call_operand.hbm [shape: f32[2,8,32], index: 5, kind: output, shape index: {0}]   ;;  %s1578_s6 = inlined_call_operand.hbm [shape: bf16[2,4,8,8], index: 6, kind: output, shape index: {1}]  }
   0x1   :  { %1589 = sst [smem:[#allocation28_spill]] %s1572_s0 }
   0x2   :  { %1590 = sst [smem:[#allocation29_spill]] %s1573_s1 }
   0x3   :  { %1591 = sst [smem:[#allocation30_spill]] %s1574_s2 }
   0x4   :  { %1592 = sst [smem:[#allocation31_spill]] %s1575_s3 }
   0x5   :  { %12 = vsyncpa [#allocation8], 0 }
   0x6   :  { %14 = vsyncpa [#allocation8 + $0x1], 0 }
   0x7   :  { %15 = vsyncpa [#allocation11], 0 }
   0x8   :  { %16 = vsyncpa [#allocation9], 0 }
   0x9   :  { %18 = vsyncpa [#allocation9 + $0x1], 0 }
   0xa   :  { %19 = vsyncpa [#allocation15], 0 }
   0xb   :  { %21 = vsyncpa [#allocation15 + $0x1], 0  ;;  %s1268_s21 = smov 0   ;;  %s1270_s22 = smov 0  }
   0xc   :  { %s1272_s23 = smov 0   ;;  %s1274_s24 = smov 0  }
   0xd   :  { %s1276_s25 = smov 0   ;;  %s1278_s26 = smov 0  }
   0xe   :  { %s1280_s27 = smov 0   ;;  %s1282_s28 = smov 0  }
   0xf   :  { %s1284_s29 = smov 0   ;;  %s1286_s30 = smov 0  }
  0x10   :  { %s1288_s7 = smov 0  }
  0x11 LB: > { %1593 = sst [smem:[#allocation20_spill]] %s1176_s21  ;;  %s1579_s8 = sadd.s32 4294967295, %s1216_s7   ;;  %s1216_s7 = sphi %s1288_s7, %s27_s7   ;;  %s1212_s30 = sphi %s1286_s30, %s1626_s30   ;;  %s1208_s29 = sphi %s1284_s29, %s1625_s29   ;;  %s1204_s28 = sphi %s1282_s28, %s1624_s28   ;;  %s1200_s27 = sphi %s1280_s27, %s1623_s27   ;;  %s1196_s26 = sphi %s1278_s26, %s1632_s26   ;;  %s1192_s25 = sphi %s1276_s25, %s1631_s25   ;;  %s1188_s24 = sphi %s1274_s24, %s1630_s24   ;;  %s1184_s23 = sphi %s1272_s23, %s1629_s23   ;;  %s1180_s22 = sphi %s1270_s22, %s1628_s22   ;;  %s1176_s21 = sphi %s1268_s21, %s1627_s21  }
  0x12   : > { %1594 = sst [smem:[#allocation21_spill]] %s1188_s24  ;;  %p770_p0 = scmp.ge.s32.totalorder %s1216_s7, 1 }
  0x13   : > { %1595 = sst [smem:[#allocation22_spill]] %s1208_s29  ;;  %p1327_p1 = scmp.eq.s32.totalorder %s1579_s8, 0 }
  0x14   : > { %1596 = sst [smem:[#allocation23_spill]] %s1212_s30  ;;  %p208_p2 = scmp.lt.s32.totalorder %s1216_s7, 9 }
  0x15   : > { %s1598_s1 = sld [smem:[#allocation29_spill]]  ;;  %s1218_s14 = smov [#allocation10]  }
  0x16   : > { %p1335_p3 = pnand %p770_p0, %p208_p2  ;;  %s221_s15 = sshll.u32 %s1218_s14, 4  ;;  %s222_s15 = int_to_ptr.vmem [resolvable:$true] %s221_s15 }
  0x17   : > { %s1600_s3 = sld [smem:[#allocation31_spill]]  ;;  %s1219_s19 = smov 64  }
  0x18   : > { %p834_p4 = pneg %p1335_p3  ;;  %s1220_s20 = smov 4  }
  0x19   : > { %s1221_s10 = smov [#allocation12]   ;;  %s36_s14 = sadd.s32 1, %s1208_s29 }
  0x1a   : > { %p835_p5 = pnand %p834_p4, %p1327_p1  ;;  %s238_s11 = sshll.u32 %s1221_s10, 4  ;;  %s239_s11 = int_to_ptr.vmem [resolvable:$true] %s238_s11 }
  0x1b   : > { %s219_s12 = sshll.u32 %s1598_s1, 4  ;;  %p37_p6 = scmp.ge.s32.totalorder %s36_s14, 4  ;;  %s220_s12 = int_to_ptr.hbm [resolvable:$true] %s219_s12 }
  0x1c   : > { %837 = dma.hbm_to_vmem [thread:$0]  (!%p835_p5), %s220_s12, 256, %s222_s15, [#allocation11], %s1219_s19, %s1219_s19, %s1220_s20  }
  0x1d   : > { %s236_s18 = sshll.u32 %s1600_s3, 4  ;;  %s39_s16 = sadd.s32 1, %s1212_s30  ;;  %s237_s18 = int_to_ptr.hbm [resolvable:$true] %s236_s18 }
  0x1e   : > { %840 = dma.hbm_to_vmem [thread:$0]  (!%p835_p5), %s237_s18, 256, %s239_s11, [#allocation11], %s1219_s19, %s1219_s19, %s1220_s20  }
  0x1f   : > { %s769_s17 = sadd.s32 4294967294, %s1216_s7   ;;  %s46_s8 = sadd.s32 1, %s1196_s26 }
  0x20   : > { %s1634_s14 = smov (%p37_p6, %s36_s14), 0  ;;  %s1636_s16 = smov (!%p37_p6, %s39_s16), %s1212_s30 }
  0x21   : > { %1601 = sst [smem:[#allocation24_spill]] %s1634_s14  ;;  %p53_p7 = scmp.ne.s32.totalorder %s1196_s26, %s1192_s25 }
  0x22   : > { %p59_p8 = scmp.ne.s32.totalorder %s1192_s25, %s1188_s24  ;;  %p41_p9 = scmp.ge.s32.totalorder %s1636_s16, 2 }
  0x23   : > { %s1602_s12 = sadd.s32 4294967295, %s1216_s7   ;;  %p54_p11 = scmp.eq.s32.totalorder %s1216_s7, 0 }
  0x24   : > { %p1359_p10 = scmp.eq.s32.totalorder %s1602_s12, 7  ;;  %p1366_p12 = por %p1327_p1, %p59_p8 }
  0x25   : > { %s1638_s16 = smov (%p41_p9, %s1636_s16), 0  ;;  %p1381_p0 = scmp.eq.s32.totalorder %s769_s17, 7 }
  0x26   : > { %1605 = sst [smem:[#allocation25_spill]] %s1638_s16  ;;  %p1377_p13 = por %p1359_p10, %p53_p7 }
  0x27   : > { %s43_s10 = ssub.s32 %s1212_s30, %s1638_s16  ;;  %s180_s11 = ssub.s32 %s1208_s29, %s1634_s14 }
  0x28   : > { %s1606_s19 = scalar_select %p1377_p13, 1, 0 }
  0x29   : > { %p44_p2 = scmp.eq.s32.totalorder %s43_s10, 0  ;;  %p1391_p4 = por %p1381_p0, %p59_p8 }
  0x2a   : > { %s181_s1 = sor.u32 %s180_s11, %s43_s10  ;;  %s184_s3 = sadd.s32 1, %s1184_s23 }
  0x2b   : > { %s1397_s24 = scalar_select %p44_p2, %s1196_s26, %s46_s8  }
  0x2c   : > { %p182_p5 = scmp.eq.s32.totalorder %s181_s1, 0  ;;  %p194_p6 = scmp.ne.s32.totalorder %s1184_s23, %s1180_s22 }
  0x2d   : > { %1609 = sst [smem:[#allocation26_spill]] %s1397_s24  ;;  %p1406_p9 = por %p54_p11, %p53_p7 }
  0x2e   : > { %p200_p13 = scmp.ne.s32.totalorder %s1180_s22, %s1176_s21  ;;  %p1417_p8 = por %p194_p6, %p1359_p10 }
  0x2f   : > { %s1413_s16 = scalar_select %p182_p5, %s1184_s23, %s184_s3  }
  0x30   : > { %p1423_p2 = por %p200_p13, %p1381_p0  ;;  %s255_s1 = sand.u32 1, %s1196_s26  }
  0x31   : > { %1611 = sst [smem:[#allocation27_spill]] %s1413_s16  ;;  %s775_s10 = sshll.u32 %s1212_s30, 3 }
  0x32   : > { %p854_p7 = scmp.lt.s32.totalorder %s1216_s7, 8  ;;  %s774_s11 = sshll.u32 %s255_s1, 3 }
  0x33   : > { %s1614_s0 = sld [smem:[#allocation28_spill]]  ;;  %s259_s16 = scalar_lea.vmem [#allocation7], %s774_s11 }
  0x34   : > { %s267_s15 = sshll.u32 %s259_s16, 4  ;;  %p842_p10 = pnand %p854_p7, %p1406_p9  ;;  %s268_s15 = int_to_ptr.vmem [resolvable:$true] %s267_s15 }
  0x35   : > { %s256_s20 = scalar_lea.sflag [#allocation8], %s255_s1  ;;  %s1438_s30 = sand.u32 (!%p1335_p3), 1, %s1192_s25  }
  0x36   : > { %s777_s24 = sshll.u32 (!%p1335_p3), %s1438_s30, 3  ;;  %s279_s29 = scalar_lea.sflag (!%p1335_p3), [#allocation8], %s1438_s30 }
  0x37   : > { %276 = sbr.rel (%p1335_p3) target bundleno = 1353 (0x549), region = 40 }
  0x39   : > { %s263_s21 = scalar_lea.hbm %s1614_s0, %s775_s10 }
  0x3a   : > { %s265_s3 = sshll.u32 %s263_s21, 4  ;;  %s282_s21 = scalar_lea.vmem (!%p1335_p3), [#allocation7], %s777_s24  ;;  %s266_s3 = int_to_ptr.hbm [resolvable:$true] %s265_s3 }
  0x3b   : > { %844 = dma.hbm_to_vmem [thread:$0]  (!%p842_p10), %s266_s3, 128, %s268_s15, %s256_s20  }
  0x3c   : > { %1159 = dma.done.wait (%p1366_p12), %s279_s29, 128  }
  0x3d   : > { %1161 = vsyncadd (%p1366_p12), %s279_s29, 4294967168 }
  0x3e   : > { %1163 = dma.done.wait (%p1327_p1), [#allocation11], 512  }
  0x3f   : > { %1165 = vsyncadd (%p1327_p1), [#allocation11], 4294966784  ;;  %s1587_s13 = sand.u32 1, %s1180_s22   ;;  %s1455_s17 = scalar_lea.vmem [#allocation13], %s777_s24 }
  0x40   : > { %s1453_s16 = sshll.u32 %s1587_s13, 2  ;;  %p782_p3 = scmp.ne.s32.totalorder %s1200_s27, 0 }
  0x41   : > { %s1588_s1 = scalar_lea.vmem [#allocation14], %s1453_s16  ;;  %s1615_s2 = sld [smem:[#allocation30_spill]] (!%p782_p3) }
  0x42   : > { %331 = sbr.rel (%p782_p3) target bundleno = 520 (0x208), region = 56  ;;  %s1222_s10 = smov (!%p782_p3), 56  }
  0x43   : > { %s1223_s11 = smov (!%p782_p3), 64   ;;  %s1224_s3 = smov (!%p782_p3), 96  }
  0x44   : > { %s1225_s15 = smov (!%p782_p3), 112   ;;  %s1226_s20 = smov (!%p782_p3), 120  }
  0x45   : > { %s1227_s24 = smov (!%p782_p3), 104   ;;  %s1228_s29 = smov (!%p782_p3), 48  }
  0x47   : > { %v817_v0 = vld [vmem:[#allocation10 + $0x8] sm:$0xff]  ;;  %v816_v1 = vld [vmem:[#allocation10] sm:$0xff]  ;;  %v332_v2 = vld [vmem:[%s282_s21] sm:$0xff]  ;;  %vm354_vm0 = vcmask 261120   ;;  %vm406_vm1 = vcmask 60416   ;;  %s1229_s21 = smov 40  }
  0x48   : > { %364 = vmatpush.bf16.msra.mxu0 %v817_v0  ;;  %v333_v3 = vpack.c.bf16 %v332_v2, %v332_v2  ;;  %v962_v4 = vld [vmem:[%s1615_s2] ss:$0 sm:$0xff] }
  0x4c   : > { %365 = vmatpush.bf16.msra.mxu0 %v816_v1 }
  0x4f   : > { %791 = vmatmul.msk.bf16.vlgmr.msra.gmra.mxu0 %vm354_vm0, %v333_v3 }
  0xcc   : > { %v367_v5 = vpop.f32.mrf.mxu0 }
  0xcd   : > { %v368_v6 = vadd.f32 %v962_v4, %v367_v5 }
  0xcf   : > { %v371_v7 = vpack.c.bf16 %v368_v6, %v368_v6 }
  0xd1   : > { %421 = vrot.lane.b32.xlu2 %v371_v7, %s1222_s10  ;;  %412 = vrot.lane.b32.xlu1 %v371_v7, %s1223_s11  ;;  %411 = vst.msk [vmem:[#allocation2] sm:$0xf] %vm406_vm1, %v371_v7 }
  0xd2   : > { %373 = vrot.lane.b32.xlu0 %v371_v7, %s1224_s3 }
  0xd4   : > { %v369_v8 = vpop.f32.mrf.mxu0 }
  0xd9   : > { %426 = vrot.lane.b32.xlu2 %v371_v7, %s1225_s15  ;;  %416 = vrot.lane.b32.xlu1 %v371_v7, %s1226_s20 }
  0xe1   : > { %436 = vrot.lane.b32.xlu2 %v371_v7, %s1227_s24  ;;  %431 = vrot.lane.b32.xlu1 %v371_v7, %s1228_s29 }
  0xe9   : > { %441 = vrot.lane.b32.xlu1 %v371_v7, %s1229_s21 }
 0x12b   : > { %v422_v9 = vpop.permute.xlu2 %421 }
 0x12c   : > { %425 = vst.msk [vmem:[#allocation3 + $0x4] sm:$0xf] %vm406_vm1, %v422_v9 }
 0x133   : > { %v427_v10 = vpop.permute.xlu2 %426 }
 0x134   : > { %430 = vst.msk [vmem:[#allocation2 + $0x8] sm:$0xf] %vm406_vm1, %v427_v10 }
 0x13b   : > { %v437_v11 = vpop.permute.xlu2 %436 }
 0x13c   : > { %440 = vst.msk [vmem:[#allocation2 + $0xc] sm:$0xf] %vm406_vm1, %v437_v11 }
 0x143   : > { %v413_v12 = vpop.permute.xlu1 %412 }
 0x144   : > { %415 = vst.msk [vmem:[#allocation3] sm:$0xf] %vm406_vm1, %v413_v12  ;;  %v374_v13 = vpop.permute.xlu0 %373 }
 0x145   : > { %376 = vxpose.xlu0.c.b16.start.end [1/1] (short) (narrow) %v374_v13, 32 }
 0x14b   : > { %v417_v14 = vpop.permute.xlu1 %416 }
 0x14c   : > { %420 = vst.msk [vmem:[#allocation2 + $0x4] sm:$0xf] %vm406_vm1, %v417_v14 }
 0x153   : > { %v432_v15 = vpop.permute.xlu1 %431 }
 0x154   : > { %435 = vst.msk [vmem:[#allocation3 + $0x8] sm:$0xf] %vm406_vm1, %v432_v15 }
 0x15b   : > { %v442_v16 = vpop.permute.xlu1 %441 }
 0x15c   : > { %445 = vst.msk [vmem:[#allocation3 + $0xc] sm:$0xf] %vm406_vm1, %v442_v16 }
 0x1f1   : > { %v384_v17 = vpop.trf.xlu0 }
 0x1f2   : > { %v394_v18 = vunpack.c.l.b16 %v384_v17  ;;  %v395_v19 = vunpack.c.h.b16 %v384_v17 }
 0x1f4   : > { %v398_v20 = vpack.c.b16 %v394_v18, %v394_v18  ;;  %v399_v21 = vpack.c.b16 %v395_v19, %v395_v19 }
 0x1f6   : > { %407 = vst.msk [vmem:[#allocation4] sm:$0xf] %vm406_vm1, %v398_v20 }
 0x1f7   : > { %408 = vst.msk [vmem:[#allocation4 + $0x4] sm:$0xf] %vm406_vm1, %v399_v21 }
 0x201   : > { %v385_v22 = vpop.trf.xlu0 }
 0x202   : > { %v396_v23 = vunpack.c.l.b16 %v385_v22  ;;  %v397_v24 = vunpack.c.h.b16 %v385_v22 }
 0x204   : > { %v400_v25 = vpack.c.b16 %v396_v23, %v396_v23  ;;  %v401_v26 = vpack.c.b16 %v397_v24, %v397_v24 }
 0x206   : > { %409 = vst.msk [vmem:[#allocation4 + $0x8] sm:$0xf] %vm406_vm1, %v400_v25 }
 0x207   : > { %410 = vst.msk [vmem:[#allocation4 + $0xc] sm:$0xf] %vm406_vm1, %v401_v26 }
 0x208 PF: > { %s794_s9 = sshll.u32 %s1200_s27, 3  ;;  %s1476_s18 = sshll.u32 %s1200_s27, 2  ;;  %vm462_vm2 = vcmask 1043456   ;;  %vm458_vm3 = vcmask 64512   ;;  %vm494_vm4 = vcmask 60416  }
 0x209   : > { %s453_s10 = sshra.s32 %s794_s9, 3  ;;  %s447_s15 = scalar_lea.vmem [#allocation2], %s1476_s18 }
 0x20a   : > { %s795_s11 = sshll.u32 %s453_s10, 2  ;;  %v448_v29 = vld [vmem:[%s447_s15] sm:$0xf]  ;;  %s450_s20 = scalar_lea.vmem [#allocation3], %s1476_s18 }
 0x20b   : > { %s456_s3 = scalar_lea.vmem [#allocation4], %s795_s11  ;;  %v451_v38 = vld [vmem:[%s450_s20] sm:$0xf]  ;;  %s517_s24 = scalar_lea.vmem [#allocation5], %s1476_s18 }
 0x20c   : > { %v500_v39 = vsel %vm462_vm2, %v451_v38, 0  ;;  %p799_p1 = scmp.ne.s32.totalorder %s1200_s27, 3 }
 0x20d   : > { %509 = vmatpush.bf16.msra.mxu1 %v500_v39  ;;  %s1230_s29 = smov (!%p799_p1), 8   ;;  %s1231_s21 = smov (!%p799_p1), 24  }
 0x20e   : > { %v457_v27 = vld [vmem:[%s456_s3] sm:$0xf]  ;;  %s1232_s9 = smov (!%p799_p1), 16  }
 0x20f   : > { %v464_v28 = vsel %vm462_vm2, %v457_v27, 0 }
 0x210   : > { %473 = vmatpush.bf16.msra.mxu0 %v464_v28 }
 0x213   : > { %796 = vmatmul.msk.bf16.vlgmr.msra.gmra.mxu0 %vm458_vm3, %v448_v29 }
 0x290   : > { %v475_v30 = vpop.f32.mrf.mxu0 }
 0x291   : > { %v479_v31 = vsel %vm458_vm3, %v475_v30, -inf }
 0x292   : > { %480 = vmax.xlane.f32.xlu0 %v479_v31 }
 0x298   : > { %v477_v32 = vpop.f32.mrf.mxu0 }
 0x305   : > { %v481_v33 = vpop.xlane.xlu0 %480 }
 0x306   : > { %v482_v34 = vsub.f32 %v475_v30, %v481_v33 }
 0x308   : > { %v483_v35 = vmul.f32 1.442695, %v482_v34 }
 0x30a   : > { %963 = vpow2.f32 %v483_v35 }
 0x310   : > { %v964_v36 = vpop.eup %963 }
 0x311   : > { %v485_v37 = vsel %vm458_vm3, %v964_v36, 0.0 }
 0x312   : > { %486 = vadd.xlane.f32.xlu0 %v485_v37 }
 0x385   : > { %v487_v40 = vpop.xlane.xlu0 %486 }
 0x386   : > { %965 = vrcp.f32 %v487_v40 }
 0x38c   : > { %v966_v41 = vpop.eup %965 }
 0x38d   : > { %v489_v42 = vmul.f32 %v966_v41, %v487_v40 }
 0x38f   : > { %v490_v43 = vsub.f32 2.0, %v489_v42 }
 0x391   : > { %v491_v44 = vmul.f32 %v966_v41, %v490_v43 }
 0x393   : > { %v492_v45 = vmul.f32 %v964_v36, %v491_v44 }
 0x395   : > { %v493_v46 = vpack.c.bf16 %v492_v45, %v492_v45 }
 0x397   : > { %495 = vst.msk [vmem:[%s1588_s1] sm:$0xf] %vm494_vm4, %v493_v46  ;;  %797 = vmatmul.msk.bf16.vlgmr.msra.gmra.mxu1 %vm458_vm3, %v493_v46 }
 0x414   : > { %v511_v47 = vpop.f32.mrf.mxu1 }
 0x415   : > { %v515_v48 = vpack.c.bf16 %v511_v47, %v511_v47 }
 0x417   : > { %518 = vst.msk [vmem:[%s517_s24] sm:$0xf] %vm494_vm4, %v515_v48 }
 0x418   : > { %522 = sbr.rel (%p799_p1) target bundleno = 1321 (0x529), region = 60 }
 0x41c   : > { %v513_v49 = vpop.f32.mrf.mxu1 }
 0x41d   : > { %v819_v54 = vld [vmem:[#allocation12 + $0x8] sm:$0xff]  ;;  %v818_v55 = vld [vmem:[#allocation12] sm:$0xff]  ;;  %vm531_vm5 = vcmask 126016   ;;  %vm539_vm6 = vcmask 191616   ;;  %vm547_vm7 = vcmask 257216   ;;  %vm570_vm8 = vcmask 261120  }
 0x41e   : > { %v526_v50 = vld [vmem:[#allocation5 + $0x4] sm:$0xf]  ;;  %v542_v51 = vld [vmem:[#allocation5 + $0xc] sm:$0xf]  ;;  %v534_v52 = vld [vmem:[#allocation5 + $0x8] sm:$0xf]  ;;  %580 = vmatpush.bf16.msra.mxu0 %v819_v54 }
 0x41f   : > { %528 = vrot.lane.b32.xlu0 %v526_v50, %s1230_s29  ;;  %544 = vrot.lane.b32.xlu1 %v542_v51, %s1231_s21  ;;  %v523_v53 = vld [vmem:[#allocation5] sm:$0xf]  ;;  %v967_v60 = vld [vmem:[%s1576_s4] ss:$0 sm:$0xff] }
 0x420   : > { %524 = vst.msk [vmem:[#allocation6] sm:$0xf] %vm494_vm4, %v523_v53 }
 0x422   : > { %581 = vmatpush.bf16.msra.mxu0 %v818_v55 }
 0x427   : > { %536 = vrot.lane.b32.xlu0 %v534_v52, %s1232_s9 }
 0x491   : > { %v529_v56 = vpop.permute.xlu0 %528  ;;  %v545_v57 = vpop.permute.xlu1 %544 }
 0x492   : > { %532 = vst.msk [vmem:[#allocation6] sm:$0xf] %vm531_vm5, %v529_v56 }
 0x499   : > { %v537_v58 = vpop.permute.xlu0 %536 }
 0x49a   : > { %540 = vst.msk [vmem:[#allocation6] sm:$0xf] %vm539_vm6, %v537_v58 }
 0x49b   : > { %548 = vst.msk [vmem:[#allocation6] sm:$0xf] %vm547_vm7, %v545_v57 }
 0x4a2   : > { %v549_v59 = vld [vmem:[#allocation6] sm:$0xf] }
 0x4a3   : > { %808 = vmatmul.msk.bf16.vlgmr.msra.gmra.mxu0 %vm570_vm8, %v549_v59 }
 0x520   : > { %v583_v61 = vpop.f32.mrf.mxu0 }
 0x521   : > { %v584_v62 = vadd.f32 %v967_v60, %v583_v61 }
 0x523   : > { %587 = vst.msk [vmem:[%s1455_s17] sm:$0xff] %vm570_vm8, %v584_v62 }
 0x528   : > { %v585_v63 = vpop.f32.mrf.mxu0 }
 0x529 PF: > { %s811_s11 = sshll.u32 %s1204_s28, 3  ;;  %s606_s24 = sshll.u32 %s1455_s17, 4  ;;  %s607_s24 = int_to_ptr.vmem [resolvable:$true] %s606_s24 }
 0x52a   : > { %s604_s20 = scalar_lea.hbm %s1577_s5, %s811_s11  ;;  %s589_s21 = scalar_lea.sflag [#allocation9], %s1438_s30 }
 0x52b   : > { %s608_s29 = sshll.u32 %s604_s20, 4  ;;  %p1616_p12 = scmp.ne.s32.totalorder %s1606_s19, 0  ;;  %s609_s29 = int_to_ptr.hbm [resolvable:$true] %s608_s29 }
 0x52c   : > { %s1072_s9 = sshra.s32 %s609_s29, 4  ;;  %s1078_s1 = scalar_lea.hbm %s1577_s5, 16  ;;  %s1073_s9 = int_to_ptr.hbm [resolvable:$true] %s1072_s9 }
 0x52d   : > { %s1074_s18 = scalar_lea.hbm %s1073_s9, 8  ;;  %p1079_p5 = scmp.lt.s32.totalorder %s1073_s9, %s1577_s5 }
 0x52e   : > { %p1075_p11 = scmp.ne.s32.totalorder %s1073_s9, %s1074_s18  ;;  %p1080_p6 = scmp.lt.s32.totalorder %s1078_s1, %s1074_s18 }
 0x530   : > { %p1076_p13 = pnand %p1075_p11, %p1616_p12  ;;  %p1081_p9 = por %p1080_p6, %p1079_p5 }
 0x532   : > { %p1077_p0 = pneg %p1076_p13 }
 0x534   : > { %p1082_p7 = pnand %p1081_p9, %p1077_p0 }
 0x536   : > { %1085 = shalt.err (!%p1082_p7)
}
 0x537   : > { %830 = dma.vmem_to_hbm [thread:$0]  (%p1616_p12), %s607_s24, 128, %s609_s29, %s589_s21  }
 0x538   : > { %s812_s30 = sshll.u32 %s1204_s28, 2  ;;  %s1617_s17 = scalar_lea.vmem [#allocation14], %s1453_s16 }
 0x539   : > { %s622_s13 = sshll.u32 %s1617_s17, 4  ;;  %s618_s11 = sadd.s32 %s1200_s27, %s812_s30  ;;  %s623_s13 = int_to_ptr.vmem [resolvable:$true] %s622_s13 }
 0x53a   : > { %s813_s3 = sshll.u32 %s618_s11, 2  ;;  %s1618_s20 = sand.u32 1, %s1180_s22  }
 0x53b   : > { %s620_s2 = scalar_lea.hbm %s1578_s6, %s813_s3  ;;  %s594_s19 = scalar_lea.sflag [#allocation15], %s1618_s20 }
 0x53c   : > { %s624_s1 = sshll.u32 %s620_s2, 4  ;;  %s1106_s27 = scalar_lea.hbm %s1578_s6, 32  ;;  %s625_s1 = int_to_ptr.hbm [resolvable:$true] %s624_s1 }
 0x53d   : > { %s1100_s9 = sshra.s32 %s625_s1, 4  ;;  %s1101_s9 = int_to_ptr.hbm [resolvable:$true] %s1100_s9 }
 0x53e   : > { %s1102_s18 = scalar_lea.hbm %s1101_s9, 4  ;;  %p1107_p11 = scmp.lt.s32.totalorder %s1101_s9, %s1578_s6 }
 0x53f   : > { %p1103_p10 = scmp.ne.s32.totalorder %s1101_s9, %s1102_s18  ;;  %p1108_p12 = scmp.lt.s32.totalorder %s1106_s27, %s1102_s18 }
 0x541   : > { %p1104_p3 = pnand %p1103_p10, %p1417_p8  ;;  %p1109_p13 = por %p1108_p12, %p1107_p11 }
 0x543   : > { %p1105_p1 = pneg %p1104_p3 }
 0x545   : > { %p1110_p0 = pnand %p1109_p13, %p1105_p1 }
 0x547   : > { %1113 = shalt.err (!%p1110_p0)
}
 0x548   : > { %831 = dma.vmem_to_hbm [thread:$0]  (%p1417_p8), %s623_s13, 64, %s625_s1, %s594_s19  }
 0x549 PF: > { %s1619_s21 = sld [smem:[#allocation21_spill]]  ;;  %p857_p5 = scmp.ge.s32.totalorder %s1216_s7, 2 }
 0x54b   : > { %p846_p6 = pnand %p857_p5, %p1391_p4 }
 0x54d   : > { %p847_p9 = pneg %p846_p6 }
 0x54f   : > { %s636_s10 = sand.u32 1, %s1619_s21  }
 0x550   : > { %s637_s30 = scalar_lea.sflag [#allocation9], %s636_s10 }
 0x551   : > { %1167 = dma.done.wait (%p847_p9), %s637_s30, 128  }
 0x552   : > { %1169 = vsyncadd (%p847_p9), %s637_s30, 4294967168  ;;  %s1620_s17 = sld [smem:[#allocation20_spill]]  ;;  %p849_p7 = pnand %p857_p5, %p1423_p2 }
 0x554   : > { %p850_p10 = pneg %p849_p7 }
 0x558   : > { %s646_s11 = sand.u32 1, %s1620_s17  }
 0x559   : > { %s647_s14 = scalar_lea.sflag [#allocation15], %s646_s11 }
 0x55a   : > { %1171 = dma.done.wait (%p850_p10), %s647_s14, 64  }
 0x55b   : > { %1173 = vsyncadd (%p850_p10), %s647_s14, 4294967232  ;;  %s27_s7 = sadd.s32 1, %s1216_s7   ;;  %s1621_s12 = sld [smem:[#allocation27_spill]] }
 0x55c   : > { %p24_p8 = scmp.ge.s32.totalorder %s27_s7, 10   ;;  %s1622_s13 = sld [smem:[#allocation26_spill]] }
 0x55d   : > { %s1623_s27 = sld [smem:[#allocation22_spill]]  ;;  %s1627_s21 = smov %s1180_s22 }
 0x55e   : > { %s1624_s28 = sld [smem:[#allocation23_spill]]  ;;  %s1628_s22 = smov %s1184_s23 }
 0x55f   : > { %s1625_s29 = sld [smem:[#allocation24_spill]]  ;;  %s1630_s24 = smov %s1192_s25 }
 0x560   : > { %s1626_s30 = sld [smem:[#allocation25_spill]]  ;;  %s1631_s25 = smov %s1196_s26 }
 0x561   : > { %s1629_s23 = smov %s1621_s12  ;;  %26 = sbr.rel (!%p24_p8) target bundleno = 17 (0x11), region = 131 }
 0x562   : > { %s1632_s26 = smov %s1622_s13 }
 0x566   :  { %653 = vsyncpa [#allocation8], 1 }
 0x567   :  { %655 = vsyncpa [#allocation8 + $0x1], 1 }
 0x568   :  { %656 = vsyncpa [#allocation11], 1 }
 0x569   :  { %657 = vsyncpa [#allocation9], 1 }
 0x56a   :  { %659 = vsyncpa [#allocation9 + $0x1], 1 }
 0x56b   :  { %660 = vsyncpa [#allocation15], 1 }
 0x56c   :  { %662 = vsyncpa [#allocation15 + $0x1], 1 }

</bundles_post_ra>
